<compile_context>
chip_gen: v7x
topology: tpu7x:2x2x1
jax: 0.10.0
libtpu: 0.0.40
codegen_flags: <defaults>
</compile_context>

<pallas_src>
import math
from functools import partial

import jax
import jax.numpy as jnp
from jax.experimental import pallas as pl
from jax.experimental.pallas import tpu as pltpu

EPS = 1e-5  # torch BatchNorm1d default eps


# ---------------------------------------------------------------------------
# In-kernel helpers (traced inside the single fused kernel)
# ---------------------------------------------------------------------------
def _bn_rows(z, gamma, beta):
    """BatchNorm with batch statistics over axis 0 (rows), channels in lanes."""
    mean = jnp.mean(z, axis=0, keepdims=True)
    var = jnp.mean((z - mean) ** 2, axis=0, keepdims=True)
    return (z - mean) * jax.lax.rsqrt(var + EPS) * gamma + beta


def _bn_row_segments(z, gamma, beta, split):
    """Per-branch BatchNorm on a row-stacked matrix: rows [0:split] and [split:]
    get independent batch statistics (matches running the same BN module twice,
    once per branch). `split` is a static, 8-aligned row count."""

    def _norm(seg):
        mean = jnp.mean(seg, axis=0, keepdims=True)
        var = jnp.mean((seg - mean) ** 2, axis=0, keepdims=True)
        return (seg - mean) * jax.lax.rsqrt(var + EPS)

    zn = jnp.concatenate([_norm(z[:split]), _norm(z[split:])], axis=0)
    return zn * gamma + beta


# ---------------------------------------------------------------------------
# The fused kernel
# ---------------------------------------------------------------------------
def _fused_forward_kernel(gcn_layers, rows_c, batch,
                          x_ref, a_ref, s_ref,
                          wg_ref, bg_ref, gg_ref, bgg_ref,
                          w1_ref, b1_ref, w2_ref, b2_ref, w3_ref, b3_ref,
                          wi_ref, bi_ref, wi2_ref, bi2_ref,
                          g1_ref, be1_ref, g2_ref, be2_ref, g3_ref, be3_ref,
                          out_ref):
    x = x_ref[...]        # (R, 30) stacked node features [chromo rows | solvent rows]
    a_blk = a_ref[...]    # (R, R) block-diagonal adjacency (both branches)
    s_pool = s_ref[...]   # (2B, R) node-sum pooling matrix

    wg = wg_ref[...]      # (30, 30) pre-transposed (in, out)
    bg = bg_ref[...]      # (1, 30)
    gg = gg_ref[...]      # (1, 30)
    bgg = bgg_ref[...]    # (1, 30)

    # ---- GCN stack: both branches in one block-diagonal system, MXU-only ----
    for _ in range(gcn_layers):
        ax = jnp.dot(a_blk, x, preferred_element_type=jnp.float32)        # (R, 30)
        y = jnp.dot(ax, wg, preferred_element_type=jnp.float32) + bg      # (R, 30)
        y = jnp.maximum(y, 0.0)                                           # ReLU
        # bngcn: per-channel stats over (nodes, batch), separately per branch
        x = _bn_row_segments(y, gg, bgg, rows_c)

    # ---- readout: node-sum as one pooling matmul ----
    z0 = jnp.dot(s_pool, x, preferred_element_type=jnp.float32)           # (2B, 30)

    # ---- shared MLP, run once on the stacked (2B, 30) matrix; BN per branch ----
    z1 = jnp.maximum(
        jnp.dot(z0, w1_ref[...], preferred_element_type=jnp.float32) + b1_ref[...], 0.0)
    z1 = _bn_row_segments(z1, g1_ref[...], be1_ref[...], batch)           # (2B, 256)
    z2 = jnp.maximum(
        jnp.dot(z1, w2_ref[...], preferred_element_type=jnp.float32) + b2_ref[...], 0.0)
    z2 = _bn_row_segments(z2, g2_ref[...], be2_ref[...], batch)           # (2B, 128)
    z3 = jnp.maximum(
        jnp.dot(z2, w3_ref[...], preferred_element_type=jnp.float32) + b3_ref[...], 0.0)
    z3 = _bn_row_segments(z3, g3_ref[...], be3_ref[...], batch)           # (2B, 64)

    # ---- interaction head: cat([z3_c, z3_s], dim=1) -> fc_int -> relu -> bn3 -> fc_int2
    # Lane-concat avoided: split fc_int's (128, 64) weight into its two static row halves.
    f3 = z3.shape[1]                                                      # 64
    wi = wi_ref[...]                                                      # (128, 64)
    ii = (jnp.dot(z3[:batch], wi[:f3, :], preferred_element_type=jnp.float32)
          + jnp.dot(z3[batch:], wi[f3:, :], preferred_element_type=jnp.float32)
          + bi_ref[...])                                                  # (B, 64)
    ii = jnp.maximum(ii, 0.0)
    ii = _bn_rows(ii, g3_ref[...], be3_ref[...])                          # torch reuses self.bn3
    out_ref[...] = jnp.dot(ii, wi2_ref[...],
                           preferred_element_type=jnp.float32) + bi2_ref[...]  # (B, 2)


# ---------------------------------------------------------------------------
# Wrapper: one jit, one pallas_call, whole-array VMEM specs
# ---------------------------------------------------------------------------
@partial(jax.jit, static_argnames=("gcn_layers",))
def _forward_jit(chromo_f, chromo_a, solv_f, solv_a, params, gcn_layers):
    # Relayout from PyTorch layout (N, F, B)/(N, N, B) to batch-major and build the
    # block-diagonal adjacency + pooling matrix feeding the MXU-only kernel.
    xc = jnp.transpose(chromo_f, (2, 0, 1)).astype(jnp.float32)   # (B, Nc, 30)
    ac = jnp.transpose(chromo_a, (2, 0, 1)).astype(jnp.float32)   # (B, Nc, Nc)
    xs = jnp.transpose(solv_f, (2, 0, 1)).astype(jnp.float32)     # (B, Ns, 30)
    a_s = jnp.transpose(solv_a, (2, 0, 1)).astype(jnp.float32)    # (B, Ns, Ns)

    b, nc, f = xc.shape
    ns = xs.shape[1]
    rows_c, rows_s = b * nc, b * ns
    r = rows_c + rows_s

    # Stacked node features: chromophore rows first, then solvent rows.
    x0 = jnp.concatenate([xc.reshape(rows_c, f), xs.reshape(rows_s, f)], axis=0)  # (R, 30)

    # Block-diagonal adjacency: A_blk[b*N+i, b*N+j] = A[b, i, j] within each branch block.
    eye_b = jnp.eye(b, dtype=jnp.float32)
    blk_c = (eye_b[:, None, :, None] * ac[:, :, None, :]).reshape(rows_c, rows_c)
    blk_s = (eye_b[:, None, :, None] * a_s[:, :, None, :]).reshape(rows_s, rows_s)
    a_blk = jnp.concatenate([
        jnp.concatenate([blk_c, jnp.zeros((rows_c, rows_s), jnp.float32)], axis=1),
        jnp.concatenate([jnp.zeros((rows_s, rows_c), jnp.float32), blk_s], axis=1),
    ], axis=0)                                                                    # (R, R)

    # Pooling matrix: row g sums the node rows of graph g (chromo rows 0..B-1,
    # solvent rows B..2B-1) -> z0 = S_pool @ X is the node-sum readout of both branches.
    pool_c = jnp.repeat(eye_b, nc, axis=1)                                        # (B, rows_c)
    pool_s = jnp.repeat(eye_b, ns, axis=1)                                        # (B, rows_s)
    s_pool = jnp.concatenate([
        jnp.concatenate([pool_c, jnp.zeros((b, rows_s), jnp.float32)], axis=1),
        jnp.concatenate([jnp.zeros((b, rows_c), jnp.float32), pool_s], axis=1),
    ], axis=0)                                                                    # (2B, R)

    args = (x0, a_blk, s_pool,
            params["wgt"], params["bg"], params["gg"], params["bgg"],
            params["w1t"], params["b1"], params["w2t"], params["b2"],
            params["w3t"], params["b3"],
            params["wit"], params["bi"], params["wi2t"], params["bi2"],
            params["g1"], params["be1"], params["g2"], params["be2"],
            params["g3"], params["be3"])

    vmem = pl.BlockSpec(memory_space=pltpu.MemorySpace.VMEM)  # whole array in VMEM, no pipelining
    return pl.pallas_call(
        partial(_fused_forward_kernel, gcn_layers, rows_c, b),
        in_specs=[vmem] * len(args),
        out_specs=vmem,
        out_shape=jax.ShapeDtypeStruct((b, 2), jnp.float32),
    )(*args)


def gcn_chem_forward(chromo_f, chromo_a, solv_f, solv_a, params, gcn_layers=2):
    """Inputs use the PyTorch layout: feats (N, 30, B), adjacency (N, N, B)."""
    return _forward_jit(chromo_f, chromo_a, solv_f, solv_a, params,
                        gcn_layers=gcn_layers)


# ---------------------------------------------------------------------------
# Deterministic parameter initialization (mimics torch Linear / BatchNorm init)
# ---------------------------------------------------------------------------
def _init_linear(key, fan_in, fan_out):
    kw, kb = jax.random.split(key)
    bound = 1.0 / math.sqrt(fan_in)
    w = jax.random.uniform(kw, (fan_out, fan_in), jnp.float32, -bound, bound)
    b = jax.random.uniform(kb, (fan_out,), jnp.float32, -bound, bound)
    return w, b


def init_params(key):
    ks = jax.random.split(key, 6)
    wg, bg = _init_linear(ks[0], 30, 30)      # self.gcn
    w1, b1 = _init_linear(ks[1], 30, 256)     # fc1
    w2, b2 = _init_linear(ks[2], 256, 128)    # fc2
    w3, b3 = _init_linear(ks[3], 128, 64)     # fc3
    wi, bi = _init_linear(ks[4], 128, 64)     # fc_int
    wi2, bi2 = _init_linear(ks[5], 64, 2)     # fc_int2

    return {
        # linear weights pre-transposed to (in, out); biases / affines as (1, C)
        "wgt": wg.T, "bg": bg.reshape(1, 30),
        "gg": jnp.ones((1, 30), jnp.float32), "bgg": jnp.zeros((1, 30), jnp.float32),
        "w1t": w1.T, "b1": b1.reshape(1, 256),
        "w2t": w2.T, "b2": b2.reshape(1, 128),
        "w3t": w3.T, "b3": b3.reshape(1, 64),
        "wit": wi.T, "bi": bi.reshape(1, 64),
        "wi2t": wi2.T, "bi2": bi2.reshape(1, 2),
        "g1": jnp.ones((1, 256), jnp.float32), "be1": jnp.zeros((1, 256), jnp.float32),
        "g2": jnp.ones((1, 128), jnp.float32), "be2": jnp.zeros((1, 128), jnp.float32),
        "g3": jnp.ones((1, 64), jnp.float32), "be3": jnp.zeros((1, 64), jnp.float32),
    }


if __name__ == "__main__":
    key = jax.random.PRNGKey(0)
    k_cf, k_ca, k_sf, k_sa, k_p = jax.random.split(key, 5)

    B = 8          # batch ("r" axis in the torch code)
    Nc, Ns = 8, 6  # nodes in chromophore / solvent graphs
    F = 30         # node feature dim

    chromo_f = jax.random.normal(k_cf, (Nc, F, B), jnp.float32)
    chromo_a = jax.random.uniform(k_ca, (Nc, Nc, B), jnp.float32)
    solv_f = jax.random.normal(k_sf, (Ns, F, B), jnp.float32)
    solv_a = jax.random.uniform(k_sa, (Ns, Ns, B), jnp.float32)

    params = init_params(k_p)

    out = gcn_chem_forward(chromo_f, chromo_a, solv_f, solv_a, params, gcn_layers=2)
    out = jax.block_until_ready(out)
    assert out.shape == (B, 2) and out.dtype == jnp.float32
    print("KERNEL_OK")
</pallas_src>

<mosaic_0001>
module attributes {stable_mosaic.version = 11 : i64} {
  func.func @_fused_forward_kernel(%arg0: memref<112x30xf32, #tpu.memory_space<vmem>>, %arg1: memref<112x112xf32, #tpu.memory_space<vmem>>, %arg2: memref<16x112xf32, #tpu.memory_space<vmem>>, %arg3: memref<30x30xf32, #tpu.memory_space<vmem>>, %arg4: memref<1x30xf32, #tpu.memory_space<vmem>>, %arg5: memref<1x30xf32, #tpu.memory_space<vmem>>, %arg6: memref<1x30xf32, #tpu.memory_space<vmem>>, %arg7: memref<30x256xf32, #tpu.memory_space<vmem>>, %arg8: memref<1x256xf32, #tpu.memory_space<vmem>>, %arg9: memref<256x128xf32, #tpu.memory_space<vmem>>, %arg10: memref<1x128xf32, #tpu.memory_space<vmem>>, %arg11: memref<128x64xf32, #tpu.memory_space<vmem>>, %arg12: memref<1x64xf32, #tpu.memory_space<vmem>>, %arg13: memref<128x64xf32, #tpu.memory_space<vmem>>, %arg14: memref<1x64xf32, #tpu.memory_space<vmem>>, %arg15: memref<64x2xf32, #tpu.memory_space<vmem>>, %arg16: memref<1x2xf32, #tpu.memory_space<vmem>>, %arg17: memref<1x256xf32, #tpu.memory_space<vmem>>, %arg18: memref<1x256xf32, #tpu.memory_space<vmem>>, %arg19: memref<1x128xf32, #tpu.memory_space<vmem>>, %arg20: memref<1x128xf32, #tpu.memory_space<vmem>>, %arg21: memref<1x64xf32, #tpu.memory_space<vmem>>, %arg22: memref<1x64xf32, #tpu.memory_space<vmem>>, %arg23: memref<8x2xf32, #tpu.memory_space<vmem>>) attributes {dimension_semantics = [], scalar_prefetch = 0 : i64, scratch_operands = 0 : i64, tpu.core_type = #tpu.core_type<tc>} {
    %c0 = arith.constant 0 : index
    %c0_0 = arith.constant 0 : index
    %0 = vector.load %arg0[%c0, %c0_0] : memref<112x30xf32, #tpu.memory_space<vmem>>, vector<112x30xf32>
    %c0_1 = arith.constant 0 : index
    %c0_2 = arith.constant 0 : index
    %1 = vector.load %arg1[%c0_1, %c0_2] : memref<112x112xf32, #tpu.memory_space<vmem>>, vector<112x112xf32>
    %c0_3 = arith.constant 0 : index
    %c0_4 = arith.constant 0 : index
    %2 = vector.load %arg2[%c0_3, %c0_4] : memref<16x112xf32, #tpu.memory_space<vmem>>, vector<16x112xf32>
    %c0_5 = arith.constant 0 : index
    %c0_6 = arith.constant 0 : index
    %3 = vector.load %arg3[%c0_5, %c0_6] : memref<30x30xf32, #tpu.memory_space<vmem>>, vector<30x30xf32>
    %c0_7 = arith.constant 0 : index
    %c0_8 = arith.constant 0 : index
    %4 = vector.load %arg4[%c0_7, %c0_8] : memref<1x30xf32, #tpu.memory_space<vmem>>, vector<1x30xf32>
    %c0_9 = arith.constant 0 : index
    %c0_10 = arith.constant 0 : index
    %5 = vector.load %arg5[%c0_9, %c0_10] : memref<1x30xf32, #tpu.memory_space<vmem>>, vector<1x30xf32>
    %c0_11 = arith.constant 0 : index
    %c0_12 = arith.constant 0 : index
    %6 = vector.load %arg6[%c0_11, %c0_12] : memref<1x30xf32, #tpu.memory_space<vmem>>, vector<1x30xf32>
    %cst = arith.constant dense<0.000000e+00> : vector<112x30xf32>
    %7 = tpu.matmul %1, %0, %cst {dimension_numbers = #tpu.dot_dimension_numbers<[1], [0], [0], [1], [0, 0, 1, 1], [], []>} : vector<112x112xf32>, vector<112x30xf32>, vector<112x30xf32> -> vector<112x30xf32>
    %cst_13 = arith.constant dense<0.000000e+00> : vector<112x30xf32>
    %8 = tpu.matmul %7, %3, %cst_13 {dimension_numbers = #tpu.dot_dimension_numbers<[1], [0], [0], [1], [0, 0, 1, 1], [], []>} : vector<112x30xf32>, vector<30x30xf32>, vector<112x30xf32> -> vector<112x30xf32>
    %9 = vector.broadcast %4 : vector<1x30xf32> to vector<112x30xf32>
    %10 = arith.addf %8, %9 : vector<112x30xf32>
    %cst_14 = arith.constant 0.000000e+00 : f32
    %11 = vector.broadcast %cst_14 : f32 to vector<112x30xf32>
    %12 = arith.maximumf %10, %11 : vector<112x30xf32>
    %13 = vector.extract_strided_slice %12 {offsets = [0, 0], sizes = [64, 30], strides = [1, 1]} : vector<112x30xf32> to vector<64x30xf32>
    %cst_15 = arith.constant dense<0.000000e+00> : vector<30xf32>
    %14 = vector.multi_reduction <add>, %13, %cst_15 [0] : vector<64x30xf32> to vector<30xf32>
    %15 = vector.shape_cast %14 : vector<30xf32> to vector<1x30xf32>
    %cst_16 = arith.constant 6.400000e+01 : f32
    %16 = vector.broadcast %cst_16 : f32 to vector<1x30xf32>
    %17 = arith.divf %15, %16 : vector<1x30xf32>
    %18 = vector.broadcast %17 : vector<1x30xf32> to vector<64x30xf32>
    %19 = arith.subf %13, %18 : vector<64x30xf32>
    %20 = arith.mulf %19, %19 : vector<64x30xf32>
    %cst_17 = arith.constant dense<0.000000e+00> : vector<30xf32>
    %21 = vector.multi_reduction <add>, %20, %cst_17 [0] : vector<64x30xf32> to vector<30xf32>
    %22 = vector.shape_cast %21 : vector<30xf32> to vector<1x30xf32>
    %cst_18 = arith.constant 6.400000e+01 : f32
    %23 = vector.broadcast %cst_18 : f32 to vector<1x30xf32>
    %24 = arith.divf %22, %23 : vector<1x30xf32>
    %25 = vector.broadcast %17 : vector<1x30xf32> to vector<64x30xf32>
    %26 = arith.subf %13, %25 : vector<64x30xf32>
    %cst_19 = arith.constant 9.99999974E-6 : f32
    %27 = vector.broadcast %cst_19 : f32 to vector<1x30xf32>
    %28 = arith.addf %24, %27 : vector<1x30xf32>
    %29 = math.rsqrt %28 : vector<1x30xf32>
    %30 = vector.broadcast %29 : vector<1x30xf32> to vector<64x30xf32>
    %31 = arith.mulf %26, %30 : vector<64x30xf32>
    %32 = vector.extract_strided_slice %12 {offsets = [64, 0], sizes = [48, 30], strides = [1, 1]} : vector<112x30xf32> to vector<48x30xf32>
    %cst_20 = arith.constant dense<0.000000e+00> : vector<30xf32>
    %33 = vector.multi_reduction <add>, %32, %cst_20 [0] : vector<48x30xf32> to vector<30xf32>
    %34 = vector.shape_cast %33 : vector<30xf32> to vector<1x30xf32>
    %cst_21 = arith.constant 4.800000e+01 : f32
    %35 = vector.broadcast %cst_21 : f32 to vector<1x30xf32>
    %36 = arith.divf %34, %35 : vector<1x30xf32>
    %37 = vector.broadcast %36 : vector<1x30xf32> to vector<48x30xf32>
    %38 = arith.subf %32, %37 : vector<48x30xf32>
    %39 = arith.mulf %38, %38 : vector<48x30xf32>
    %cst_22 = arith.constant dense<0.000000e+00> : vector<30xf32>
    %40 = vector.multi_reduction <add>, %39, %cst_22 [0] : vector<48x30xf32> to vector<30xf32>
    %41 = vector.shape_cast %40 : vector<30xf32> to vector<1x30xf32>
    %cst_23 = arith.constant 4.800000e+01 : f32
    %42 = vector.broadcast %cst_23 : f32 to vector<1x30xf32>
    %43 = arith.divf %41, %42 : vector<1x30xf32>
    %44 = vector.broadcast %36 : vector<1x30xf32> to vector<48x30xf32>
    %45 = arith.subf %32, %44 : vector<48x30xf32>
    %cst_24 = arith.constant 9.99999974E-6 : f32
    %46 = vector.broadcast %cst_24 : f32 to vector<1x30xf32>
    %47 = arith.addf %43, %46 : vector<1x30xf32>
    %48 = math.rsqrt %47 : vector<1x30xf32>
    %49 = vector.broadcast %48 : vector<1x30xf32> to vector<48x30xf32>
    %50 = arith.mulf %45, %49 : vector<48x30xf32>
    %51 = tpu.concatenate %31, %50 in 0 : vector<64x30xf32>, vector<48x30xf32> -> vector<112x30xf32>
    %52 = vector.broadcast %5 : vector<1x30xf32> to vector<112x30xf32>
    %53 = arith.mulf %51, %52 : vector<112x30xf32>
    %54 = vector.broadcast %6 : vector<1x30xf32> to vector<112x30xf32>
    %55 = arith.addf %53, %54 : vector<112x30xf32>
    %cst_25 = arith.constant dense<0.000000e+00> : vector<112x30xf32>
    %56 = tpu.matmul %1, %55, %cst_25 {dimension_numbers = #tpu.dot_dimension_numbers<[1], [0], [0], [1], [0, 0, 1, 1], [], []>} : vector<112x112xf32>, vector<112x30xf32>, vector<112x30xf32> -> vector<112x30xf32>
    %cst_26 = arith.constant dense<0.000000e+00> : vector<112x30xf32>
    %57 = tpu.matmul %56, %3, %cst_26 {dimension_numbers = #tpu.dot_dimension_numbers<[1], [0], [0], [1], [0, 0, 1, 1], [], []>} : vector<112x30xf32>, vector<30x30xf32>, vector<112x30xf32> -> vector<112x30xf32>
    %58 = vector.broadcast %4 : vector<1x30xf32> to vector<112x30xf32>
    %59 = arith.addf %57, %58 : vector<112x30xf32>
    %cst_27 = arith.constant 0.000000e+00 : f32
    %60 = vector.broadcast %cst_27 : f32 to vector<112x30xf32>
    %61 = arith.maximumf %59, %60 : vector<112x30xf32>
    %62 = vector.extract_strided_slice %61 {offsets = [0, 0], sizes = [64, 30], strides = [1, 1]} : vector<112x30xf32> to vector<64x30xf32>
    %cst_28 = arith.constant dense<0.000000e+00> : vector<30xf32>
    %63 = vector.multi_reduction <add>, %62, %cst_28 [0] : vector<64x30xf32> to vector<30xf32>
    %64 = vector.shape_cast %63 : vector<30xf32> to vector<1x30xf32>
    %cst_29 = arith.constant 6.400000e+01 : f32
    %65 = vector.broadcast %cst_29 : f32 to vector<1x30xf32>
    %66 = arith.divf %64, %65 : vector<1x30xf32>
    %67 = vector.broadcast %66 : vector<1x30xf32> to vector<64x30xf32>
    %68 = arith.subf %62, %67 : vector<64x30xf32>
    %69 = arith.mulf %68, %68 : vector<64x30xf32>
    %cst_30 = arith.constant dense<0.000000e+00> : vector<30xf32>
    %70 = vector.multi_reduction <add>, %69, %cst_30 [0] : vector<64x30xf32> to vector<30xf32>
    %71 = vector.shape_cast %70 : vector<30xf32> to vector<1x30xf32>
    %cst_31 = arith.constant 6.400000e+01 : f32
    %72 = vector.broadcast %cst_31 : f32 to vector<1x30xf32>
    %73 = arith.divf %71, %72 : vector<1x30xf32>
    %74 = vector.broadcast %66 : vector<1x30xf32> to vector<64x30xf32>
    %75 = arith.subf %62, %74 : vector<64x30xf32>
    %cst_32 = arith.constant 9.99999974E-6 : f32
    %76 = vector.broadcast %cst_32 : f32 to vector<1x30xf32>
    %77 = arith.addf %73, %76 : vector<1x30xf32>
    %78 = math.rsqrt %77 : vector<1x30xf32>
    %79 = vector.broadcast %78 : vector<1x30xf32> to vector<64x30xf32>
    %80 = arith.mulf %75, %79 : vector<64x30xf32>
    %81 = vector.extract_strided_slice %61 {offsets = [64, 0], sizes = [48, 30], strides = [1, 1]} : vector<112x30xf32> to vector<48x30xf32>
    %cst_33 = arith.constant dense<0.000000e+00> : vector<30xf32>
    %82 = vector.multi_reduction <add>, %81, %cst_33 [0] : vector<48x30xf32> to vector<30xf32>
    %83 = vector.shape_cast %82 : vector<30xf32> to vector<1x30xf32>
    %cst_34 = arith.constant 4.800000e+01 : f32
    %84 = vector.broadcast %cst_34 : f32 to vector<1x30xf32>
    %85 = arith.divf %83, %84 : vector<1x30xf32>
    %86 = vector.broadcast %85 : vector<1x30xf32> to vector<48x30xf32>
    %87 = arith.subf %81, %86 : vector<48x30xf32>
    %88 = arith.mulf %87, %87 : vector<48x30xf32>
    %cst_35 = arith.constant dense<0.000000e+00> : vector<30xf32>
    %89 = vector.multi_reduction <add>, %88, %cst_35 [0] : vector<48x30xf32> to vector<30xf32>
    %90 = vector.shape_cast %89 : vector<30xf32> to vector<1x30xf32>
    %cst_36 = arith.constant 4.800000e+01 : f32
    %91 = vector.broadcast %cst_36 : f32 to vector<1x30xf32>
    %92 = arith.divf %90, %91 : vector<1x30xf32>
    %93 = vector.broadcast %85 : vector<1x30xf32> to vector<48x30xf32>
    %94 = arith.subf %81, %93 : vector<48x30xf32>
    %cst_37 = arith.constant 9.99999974E-6 : f32
    %95 = vector.broadcast %cst_37 : f32 to vector<1x30xf32>
    %96 = arith.addf %92, %95 : vector<1x30xf32>
    %97 = math.rsqrt %96 : vector<1x30xf32>
    %98 = vector.broadcast %97 : vector<1x30xf32> to vector<48x30xf32>
    %99 = arith.mulf %94, %98 : vector<48x30xf32>
    %100 = tpu.concatenate %80, %99 in 0 : vector<64x30xf32>, vector<48x30xf32> -> vector<112x30xf32>
    %101 = vector.broadcast %5 : vector<1x30xf32> to vector<112x30xf32>
    %102 = arith.mulf %100, %101 : vector<112x30xf32>
    %103 = vector.broadcast %6 : vector<1x30xf32> to vector<112x30xf32>
    %104 = arith.addf %102, %103 : vector<112x30xf32>
    %cst_38 = arith.constant dense<0.000000e+00> : vector<16x30xf32>
    %105 = tpu.matmul %2, %104, %cst_38 {dimension_numbers = #tpu.dot_dimension_numbers<[1], [0], [0], [1], [0, 0, 1, 1], [], []>} : vector<16x112xf32>, vector<112x30xf32>, vector<16x30xf32> -> vector<16x30xf32>
    %c0_39 = arith.constant 0 : index
    %c0_40 = arith.constant 0 : index
    %106 = vector.load %arg7[%c0_39, %c0_40] : memref<30x256xf32, #tpu.memory_space<vmem>>, vector<30x256xf32>
    %cst_41 = arith.constant dense<0.000000e+00> : vector<16x256xf32>
    %107 = tpu.matmul %105, %106, %cst_41 {dimension_numbers = #tpu.dot_dimension_numbers<[1], [0], [0], [1], [0, 0, 1, 1], [], []>} : vector<16x30xf32>, vector<30x256xf32>, vector<16x256xf32> -> vector<16x256xf32>
    %c0_42 = arith.constant 0 : index
    %c0_43 = arith.constant 0 : index
    %108 = vector.load %arg8[%c0_42, %c0_43] : memref<1x256xf32, #tpu.memory_space<vmem>>, vector<1x256xf32>
    %109 = vector.broadcast %108 : vector<1x256xf32> to vector<16x256xf32>
    %110 = arith.addf %107, %109 : vector<16x256xf32>
    %cst_44 = arith.constant 0.000000e+00 : f32
    %111 = vector.broadcast %cst_44 : f32 to vector<16x256xf32>
    %112 = arith.maximumf %110, %111 : vector<16x256xf32>
    %c0_45 = arith.constant 0 : index
    %c0_46 = arith.constant 0 : index
    %113 = vector.load %arg17[%c0_45, %c0_46] : memref<1x256xf32, #tpu.memory_space<vmem>>, vector<1x256xf32>
    %c0_47 = arith.constant 0 : index
    %c0_48 = arith.constant 0 : index
    %114 = vector.load %arg18[%c0_47, %c0_48] : memref<1x256xf32, #tpu.memory_space<vmem>>, vector<1x256xf32>
    %115 = vector.extract_strided_slice %112 {offsets = [0, 0], sizes = [8, 256], strides = [1, 1]} : vector<16x256xf32> to vector<8x256xf32>
    %cst_49 = arith.constant dense<0.000000e+00> : vector<256xf32>
    %116 = vector.multi_reduction <add>, %115, %cst_49 [0] : vector<8x256xf32> to vector<256xf32>
    %117 = vector.shape_cast %116 : vector<256xf32> to vector<1x256xf32>
    %cst_50 = arith.constant 8.000000e+00 : f32
    %118 = vector.broadcast %cst_50 : f32 to vector<1x256xf32>
    %119 = arith.divf %117, %118 : vector<1x256xf32>
    %120 = vector.broadcast %119 : vector<1x256xf32> to vector<8x256xf32>
    %121 = arith.subf %115, %120 : vector<8x256xf32>
    %122 = arith.mulf %121, %121 : vector<8x256xf32>
    %cst_51 = arith.constant dense<0.000000e+00> : vector<256xf32>
    %123 = vector.multi_reduction <add>, %122, %cst_51 [0] : vector<8x256xf32> to vector<256xf32>
    %124 = vector.shape_cast %123 : vector<256xf32> to vector<1x256xf32>
    %cst_52 = arith.constant 8.000000e+00 : f32
    %125 = vector.broadcast %cst_52 : f32 to vector<1x256xf32>
    %126 = arith.divf %124, %125 : vector<1x256xf32>
    %127 = vector.broadcast %119 : vector<1x256xf32> to vector<8x256xf32>
    %128 = arith.subf %115, %127 : vector<8x256xf32>
    %cst_53 = arith.constant 9.99999974E-6 : f32
    %129 = vector.broadcast %cst_53 : f32 to vector<1x256xf32>
    %130 = arith.addf %126, %129 : vector<1x256xf32>
    %131 = math.rsqrt %130 : vector<1x256xf32>
    %132 = vector.broadcast %131 : vector<1x256xf32> to vector<8x256xf32>
    %133 = arith.mulf %128, %132 : vector<8x256xf32>
    %134 = vector.extract_strided_slice %112 {offsets = [8, 0], sizes = [8, 256], strides = [1, 1]} : vector<16x256xf32> to vector<8x256xf32>
    %cst_54 = arith.constant dense<0.000000e+00> : vector<256xf32>
    %135 = vector.multi_reduction <add>, %134, %cst_54 [0] : vector<8x256xf32> to vector<256xf32>
    %136 = vector.shape_cast %135 : vector<256xf32> to vector<1x256xf32>
    %cst_55 = arith.constant 8.000000e+00 : f32
    %137 = vector.broadcast %cst_55 : f32 to vector<1x256xf32>
    %138 = arith.divf %136, %137 : vector<1x256xf32>
    %139 = vector.broadcast %138 : vector<1x256xf32> to vector<8x256xf32>
    %140 = arith.subf %134, %139 : vector<8x256xf32>
    %141 = arith.mulf %140, %140 : vector<8x256xf32>
    %cst_56 = arith.constant dense<0.000000e+00> : vector<256xf32>
    %142 = vector.multi_reduction <add>, %141, %cst_56 [0] : vector<8x256xf32> to vector<256xf32>
    %143 = vector.shape_cast %142 : vector<256xf32> to vector<1x256xf32>
    %cst_57 = arith.constant 8.000000e+00 : f32
    %144 = vector.broadcast %cst_57 : f32 to vector<1x256xf32>
    %145 = arith.divf %143, %144 : vector<1x256xf32>
    %146 = vector.broadcast %138 : vector<1x256xf32> to vector<8x256xf32>
    %147 = arith.subf %134, %146 : vector<8x256xf32>
    %cst_58 = arith.constant 9.99999974E-6 : f32
    %148 = vector.broadcast %cst_58 : f32 to vector<1x256xf32>
    %149 = arith.addf %145, %148 : vector<1x256xf32>
    %150 = math.rsqrt %149 : vector<1x256xf32>
    %151 = vector.broadcast %150 : vector<1x256xf32> to vector<8x256xf32>
    %152 = arith.mulf %147, %151 : vector<8x256xf32>
    %153 = tpu.concatenate %133, %152 in 0 : vector<8x256xf32>, vector<8x256xf32> -> vector<16x256xf32>
    %154 = vector.broadcast %113 : vector<1x256xf32> to vector<16x256xf32>
    %155 = arith.mulf %153, %154 : vector<16x256xf32>
    %156 = vector.broadcast %114 : vector<1x256xf32> to vector<16x256xf32>
    %157 = arith.addf %155, %156 : vector<16x256xf32>
    %c0_59 = arith.constant 0 : index
    %c0_60 = arith.constant 0 : index
    %158 = vector.load %arg9[%c0_59, %c0_60] : memref<256x128xf32, #tpu.memory_space<vmem>>, vector<256x128xf32>
    %cst_61 = arith.constant dense<0.000000e+00> : vector<16x128xf32>
    %159 = tpu.matmul %157, %158, %cst_61 {dimension_numbers = #tpu.dot_dimension_numbers<[1], [0], [0], [1], [0, 0, 1, 1], [], []>} : vector<16x256xf32>, vector<256x128xf32>, vector<16x128xf32> -> vector<16x128xf32>
    %c0_62 = arith.constant 0 : index
    %c0_63 = arith.constant 0 : index
    %160 = vector.load %arg10[%c0_62, %c0_63] : memref<1x128xf32, #tpu.memory_space<vmem>>, vector<1x128xf32>
    %161 = vector.broadcast %160 : vector<1x128xf32> to vector<16x128xf32>
    %162 = arith.addf %159, %161 : vector<16x128xf32>
    %cst_64 = arith.constant 0.000000e+00 : f32
    %163 = vector.broadcast %cst_64 : f32 to vector<16x128xf32>
    %164 = arith.maximumf %162, %163 : vector<16x128xf32>
    %c0_65 = arith.constant 0 : index
    %c0_66 = arith.constant 0 : index
    %165 = vector.load %arg19[%c0_65, %c0_66] : memref<1x128xf32, #tpu.memory_space<vmem>>, vector<1x128xf32>
    %c0_67 = arith.constant 0 : index
    %c0_68 = arith.constant 0 : index
    %166 = vector.load %arg20[%c0_67, %c0_68] : memref<1x128xf32, #tpu.memory_space<vmem>>, vector<1x128xf32>
    %167 = vector.extract_strided_slice %164 {offsets = [0, 0], sizes = [8, 128], strides = [1, 1]} : vector<16x128xf32> to vector<8x128xf32>
    %cst_69 = arith.constant dense<0.000000e+00> : vector<128xf32>
    %168 = vector.multi_reduction <add>, %167, %cst_69 [0] : vector<8x128xf32> to vector<128xf32>
    %169 = vector.shape_cast %168 : vector<128xf32> to vector<1x128xf32>
    %cst_70 = arith.constant 8.000000e+00 : f32
    %170 = vector.broadcast %cst_70 : f32 to vector<1x128xf32>
    %171 = arith.divf %169, %170 : vector<1x128xf32>
    %172 = vector.broadcast %171 : vector<1x128xf32> to vector<8x128xf32>
    %173 = arith.subf %167, %172 : vector<8x128xf32>
    %174 = arith.mulf %173, %173 : vector<8x128xf32>
    %cst_71 = arith.constant dense<0.000000e+00> : vector<128xf32>
    %175 = vector.multi_reduction <add>, %174, %cst_71 [0] : vector<8x128xf32> to vector<128xf32>
    %176 = vector.shape_cast %175 : vector<128xf32> to vector<1x128xf32>
    %cst_72 = arith.constant 8.000000e+00 : f32
    %177 = vector.broadcast %cst_72 : f32 to vector<1x128xf32>
    %178 = arith.divf %176, %177 : vector<1x128xf32>
    %179 = vector.broadcast %171 : vector<1x128xf32> to vector<8x128xf32>
    %180 = arith.subf %167, %179 : vector<8x128xf32>
    %cst_73 = arith.constant 9.99999974E-6 : f32
    %181 = vector.broadcast %cst_73 : f32 to vector<1x128xf32>
    %182 = arith.addf %178, %181 : vector<1x128xf32>
    %183 = math.rsqrt %182 : vector<1x128xf32>
    %184 = vector.broadcast %183 : vector<1x128xf32> to vector<8x128xf32>
    %185 = arith.mulf %180, %184 : vector<8x128xf32>
    %186 = vector.extract_strided_slice %164 {offsets = [8, 0], sizes = [8, 128], strides = [1, 1]} : vector<16x128xf32> to vector<8x128xf32>
    %cst_74 = arith.constant dense<0.000000e+00> : vector<128xf32>
    %187 = vector.multi_reduction <add>, %186, %cst_74 [0] : vector<8x128xf32> to vector<128xf32>
    %188 = vector.shape_cast %187 : vector<128xf32> to vector<1x128xf32>
    %cst_75 = arith.constant 8.000000e+00 : f32
    %189 = vector.broadcast %cst_75 : f32 to vector<1x128xf32>
    %190 = arith.divf %188, %189 : vector<1x128xf32>
    %191 = vector.broadcast %190 : vector<1x128xf32> to vector<8x128xf32>
    %192 = arith.subf %186, %191 : vector<8x128xf32>
    %193 = arith.mulf %192, %192 : vector<8x128xf32>
    %cst_76 = arith.constant dense<0.000000e+00> : vector<128xf32>
    %194 = vector.multi_reduction <add>, %193, %cst_76 [0] : vector<8x128xf32> to vector<128xf32>
    %195 = vector.shape_cast %194 : vector<128xf32> to vector<1x128xf32>
    %cst_77 = arith.constant 8.000000e+00 : f32
    %196 = vector.broadcast %cst_77 : f32 to vector<1x128xf32>
    %197 = arith.divf %195, %196 : vector<1x128xf32>
    %198 = vector.broadcast %190 : vector<1x128xf32> to vector<8x128xf32>
    %199 = arith.subf %186, %198 : vector<8x128xf32>
    %cst_78 = arith.constant 9.99999974E-6 : f32
    %200 = vector.broadcast %cst_78 : f32 to vector<1x128xf32>
    %201 = arith.addf %197, %200 : vector<1x128xf32>
    %202 = math.rsqrt %201 : vector<1x128xf32>
    %203 = vector.broadcast %202 : vector<1x128xf32> to vector<8x128xf32>
    %204 = arith.mulf %199, %203 : vector<8x128xf32>
    %205 = tpu.concatenate %185, %204 in 0 : vector<8x128xf32>, vector<8x128xf32> -> vector<16x128xf32>
    %206 = vector.broadcast %165 : vector<1x128xf32> to vector<16x128xf32>
    %207 = arith.mulf %205, %206 : vector<16x128xf32>
    %208 = vector.broadcast %166 : vector<1x128xf32> to vector<16x128xf32>
    %209 = arith.addf %207, %208 : vector<16x128xf32>
    %c0_79 = arith.constant 0 : index
    %c0_80 = arith.constant 0 : index
    %210 = vector.load %arg11[%c0_79, %c0_80] : memref<128x64xf32, #tpu.memory_space<vmem>>, vector<128x64xf32>
    %cst_81 = arith.constant dense<0.000000e+00> : vector<16x64xf32>
    %211 = tpu.matmul %209, %210, %cst_81 {dimension_numbers = #tpu.dot_dimension_numbers<[1], [0], [0], [1], [0, 0, 1, 1], [], []>} : vector<16x128xf32>, vector<128x64xf32>, vector<16x64xf32> -> vector<16x64xf32>
    %c0_82 = arith.constant 0 : index
    %c0_83 = arith.constant 0 : index
    %212 = vector.load %arg12[%c0_82, %c0_83] : memref<1x64xf32, #tpu.memory_space<vmem>>, vector<1x64xf32>
    %213 = vector.broadcast %212 : vector<1x64xf32> to vector<16x64xf32>
    %214 = arith.addf %211, %213 : vector<16x64xf32>
    %cst_84 = arith.constant 0.000000e+00 : f32
    %215 = vector.broadcast %cst_84 : f32 to vector<16x64xf32>
    %216 = arith.maximumf %214, %215 : vector<16x64xf32>
    %c0_85 = arith.constant 0 : index
    %c0_86 = arith.constant 0 : index
    %217 = vector.load %arg21[%c0_85, %c0_86] : memref<1x64xf32, #tpu.memory_space<vmem>>, vector<1x64xf32>
    %c0_87 = arith.constant 0 : index
    %c0_88 = arith.constant 0 : index
    %218 = vector.load %arg22[%c0_87, %c0_88] : memref<1x64xf32, #tpu.memory_space<vmem>>, vector<1x64xf32>
    %219 = vector.extract_strided_slice %216 {offsets = [0, 0], sizes = [8, 64], strides = [1, 1]} : vector<16x64xf32> to vector<8x64xf32>
    %cst_89 = arith.constant dense<0.000000e+00> : vector<64xf32>
    %220 = vector.multi_reduction <add>, %219, %cst_89 [0] : vector<8x64xf32> to vector<64xf32>
    %221 = vector.shape_cast %220 : vector<64xf32> to vector<1x64xf32>
    %cst_90 = arith.constant 8.000000e+00 : f32
    %222 = vector.broadcast %cst_90 : f32 to vector<1x64xf32>
    %223 = arith.divf %221, %222 : vector<1x64xf32>
    %224 = vector.broadcast %223 : vector<1x64xf32> to vector<8x64xf32>
    %225 = arith.subf %219, %224 : vector<8x64xf32>
    %226 = arith.mulf %225, %225 : vector<8x64xf32>
    %cst_91 = arith.constant dense<0.000000e+00> : vector<64xf32>
    %227 = vector.multi_reduction <add>, %226, %cst_91 [0] : vector<8x64xf32> to vector<64xf32>
    %228 = vector.shape_cast %227 : vector<64xf32> to vector<1x64xf32>
    %cst_92 = arith.constant 8.000000e+00 : f32
    %229 = vector.broadcast %cst_92 : f32 to vector<1x64xf32>
    %230 = arith.divf %228, %229 : vector<1x64xf32>
    %231 = vector.broadcast %223 : vector<1x64xf32> to vector<8x64xf32>
    %232 = arith.subf %219, %231 : vector<8x64xf32>
    %cst_93 = arith.constant 9.99999974E-6 : f32
    %233 = vector.broadcast %cst_93 : f32 to vector<1x64xf32>
    %234 = arith.addf %230, %233 : vector<1x64xf32>
    %235 = math.rsqrt %234 : vector<1x64xf32>
    %236 = vector.broadcast %235 : vector<1x64xf32> to vector<8x64xf32>
    %237 = arith.mulf %232, %236 : vector<8x64xf32>
    %238 = vector.extract_strided_slice %216 {offsets = [8, 0], sizes = [8, 64], strides = [1, 1]} : vector<16x64xf32> to vector<8x64xf32>
    %cst_94 = arith.constant dense<0.000000e+00> : vector<64xf32>
    %239 = vector.multi_reduction <add>, %238, %cst_94 [0] : vector<8x64xf32> to vector<64xf32>
    %240 = vector.shape_cast %239 : vector<64xf32> to vector<1x64xf32>
    %cst_95 = arith.constant 8.000000e+00 : f32
    %241 = vector.broadcast %cst_95 : f32 to vector<1x64xf32>
    %242 = arith.divf %240, %241 : vector<1x64xf32>
    %243 = vector.broadcast %242 : vector<1x64xf32> to vector<8x64xf32>
    %244 = arith.subf %238, %243 : vector<8x64xf32>
    %245 = arith.mulf %244, %244 : vector<8x64xf32>
    %cst_96 = arith.constant dense<0.000000e+00> : vector<64xf32>
    %246 = vector.multi_reduction <add>, %245, %cst_96 [0] : vector<8x64xf32> to vector<64xf32>
    %247 = vector.shape_cast %246 : vector<64xf32> to vector<1x64xf32>
    %cst_97 = arith.constant 8.000000e+00 : f32
    %248 = vector.broadcast %cst_97 : f32 to vector<1x64xf32>
    %249 = arith.divf %247, %248 : vector<1x64xf32>
    %250 = vector.broadcast %242 : vector<1x64xf32> to vector<8x64xf32>
    %251 = arith.subf %238, %250 : vector<8x64xf32>
    %cst_98 = arith.constant 9.99999974E-6 : f32
    %252 = vector.broadcast %cst_98 : f32 to vector<1x64xf32>
    %253 = arith.addf %249, %252 : vector<1x64xf32>
    %254 = math.rsqrt %253 : vector<1x64xf32>
    %255 = vector.broadcast %254 : vector<1x64xf32> to vector<8x64xf32>
    %256 = arith.mulf %251, %255 : vector<8x64xf32>
    %257 = tpu.concatenate %237, %256 in 0 : vector<8x64xf32>, vector<8x64xf32> -> vector<16x64xf32>
    %258 = vector.broadcast %217 : vector<1x64xf32> to vector<16x64xf32>
    %259 = arith.mulf %257, %258 : vector<16x64xf32>
    %260 = vector.broadcast %218 : vector<1x64xf32> to vector<16x64xf32>
    %261 = arith.addf %259, %260 : vector<16x64xf32>
    %c0_99 = arith.constant 0 : index
    %c0_100 = arith.constant 0 : index
    %262 = vector.load %arg13[%c0_99, %c0_100] : memref<128x64xf32, #tpu.memory_space<vmem>>, vector<128x64xf32>
    %263 = vector.extract_strided_slice %261 {offsets = [0, 0], sizes = [8, 64], strides = [1, 1]} : vector<16x64xf32> to vector<8x64xf32>
    %264 = vector.extract_strided_slice %262 {offsets = [0, 0], sizes = [64, 64], strides = [1, 1]} : vector<128x64xf32> to vector<64x64xf32>
    %cst_101 = arith.constant dense<0.000000e+00> : vector<8x64xf32>
    %265 = tpu.matmul %263, %264, %cst_101 {dimension_numbers = #tpu.dot_dimension_numbers<[1], [0], [0], [1], [0, 0, 1, 1], [], []>} : vector<8x64xf32>, vector<64x64xf32>, vector<8x64xf32> -> vector<8x64xf32>
    %266 = vector.extract_strided_slice %261 {offsets = [8, 0], sizes = [8, 64], strides = [1, 1]} : vector<16x64xf32> to vector<8x64xf32>
    %267 = vector.extract_strided_slice %262 {offsets = [64, 0], sizes = [64, 64], strides = [1, 1]} : vector<128x64xf32> to vector<64x64xf32>
    %cst_102 = arith.constant dense<0.000000e+00> : vector<8x64xf32>
    %268 = tpu.matmul %266, %267, %cst_102 {dimension_numbers = #tpu.dot_dimension_numbers<[1], [0], [0], [1], [0, 0, 1, 1], [], []>} : vector<8x64xf32>, vector<64x64xf32>, vector<8x64xf32> -> vector<8x64xf32>
    %269 = arith.addf %265, %268 : vector<8x64xf32>
    %c0_103 = arith.constant 0 : index
    %c0_104 = arith.constant 0 : index
    %270 = vector.load %arg14[%c0_103, %c0_104] : memref<1x64xf32, #tpu.memory_space<vmem>>, vector<1x64xf32>
    %271 = vector.broadcast %270 : vector<1x64xf32> to vector<8x64xf32>
    %272 = arith.addf %269, %271 : vector<8x64xf32>
    %cst_105 = arith.constant 0.000000e+00 : f32
    %273 = vector.broadcast %cst_105 : f32 to vector<8x64xf32>
    %274 = arith.maximumf %272, %273 : vector<8x64xf32>
    %c0_106 = arith.constant 0 : index
    %c0_107 = arith.constant 0 : index
    %275 = vector.load %arg21[%c0_106, %c0_107] : memref<1x64xf32, #tpu.memory_space<vmem>>, vector<1x64xf32>
    %c0_108 = arith.constant 0 : index
    %c0_109 = arith.constant 0 : index
    %276 = vector.load %arg22[%c0_108, %c0_109] : memref<1x64xf32, #tpu.memory_space<vmem>>, vector<1x64xf32>
    %cst_110 = arith.constant dense<0.000000e+00> : vector<64xf32>
    %277 = vector.multi_reduction <add>, %274, %cst_110 [0] : vector<8x64xf32> to vector<64xf32>
    %278 = vector.shape_cast %277 : vector<64xf32> to vector<1x64xf32>
    %cst_111 = arith.constant 8.000000e+00 : f32
    %279 = vector.broadcast %cst_111 : f32 to vector<1x64xf32>
    %280 = arith.divf %278, %279 : vector<1x64xf32>
    %281 = vector.broadcast %280 : vector<1x64xf32> to vector<8x64xf32>
    %282 = arith.subf %274, %281 : vector<8x64xf32>
    %283 = arith.mulf %282, %282 : vector<8x64xf32>
    %cst_112 = arith.constant dense<0.000000e+00> : vector<64xf32>
    %284 = vector.multi_reduction <add>, %283, %cst_112 [0] : vector<8x64xf32> to vector<64xf32>
    %285 = vector.shape_cast %284 : vector<64xf32> to vector<1x64xf32>
    %cst_113 = arith.constant 8.000000e+00 : f32
    %286 = vector.broadcast %cst_113 : f32 to vector<1x64xf32>
    %287 = arith.divf %285, %286 : vector<1x64xf32>
    %288 = vector.broadcast %280 : vector<1x64xf32> to vector<8x64xf32>
    %289 = arith.subf %274, %288 : vector<8x64xf32>
    %cst_114 = arith.constant 9.99999974E-6 : f32
    %290 = vector.broadcast %cst_114 : f32 to vector<1x64xf32>
    %291 = arith.addf %287, %290 : vector<1x64xf32>
    %292 = math.rsqrt %291 : vector<1x64xf32>
    %293 = vector.broadcast %292 : vector<1x64xf32> to vector<8x64xf32>
    %294 = arith.mulf %289, %293 : vector<8x64xf32>
    %295 = vector.broadcast %275 : vector<1x64xf32> to vector<8x64xf32>
    %296 = arith.mulf %294, %295 : vector<8x64xf32>
    %297 = vector.broadcast %276 : vector<1x64xf32> to vector<8x64xf32>
    %298 = arith.addf %296, %297 : vector<8x64xf32>
    %c0_115 = arith.constant 0 : index
    %c0_116 = arith.constant 0 : index
    %299 = vector.load %arg15[%c0_115, %c0_116] : memref<64x2xf32, #tpu.memory_space<vmem>>, vector<64x2xf32>
    %cst_117 = arith.constant dense<0.000000e+00> : vector<8x2xf32>
    %300 = tpu.matmul %298, %299, %cst_117 {dimension_numbers = #tpu.dot_dimension_numbers<[1], [0], [0], [1], [0, 0, 1, 1], [], []>} : vector<8x64xf32>, vector<64x2xf32>, vector<8x2xf32> -> vector<8x2xf32>
    %c0_118 = arith.constant 0 : index
    %c0_119 = arith.constant 0 : index
    %301 = vector.load %arg16[%c0_118, %c0_119] : memref<1x2xf32, #tpu.memory_space<vmem>>, vector<1x2xf32>
    %302 = vector.broadcast %301 : vector<1x2xf32> to vector<8x2xf32>
    %303 = arith.addf %300, %302 : vector<8x2xf32>
    %c0_120 = arith.constant 0 : index
    %c0_121 = arith.constant 0 : index
    %304 = vector.load %arg23[%c0_120, %c0_121] : memref<8x2xf32, #tpu.memory_space<vmem>>, vector<8x2xf32>
    tpu.vector_store %arg23[%c0_120, %c0_121], %303 {strides = array<i32>} : memref<8x2xf32, #tpu.memory_space<vmem>>, vector<8x2xf32>,
    return
  }
}

</mosaic_0001>

<bundles_post_ra>
// kernel: _forward_jit.1
= control target key start
LH: loop header
LB: loop body
LE: loop exit
PB: predicated region body
PF: predicated region fallthrough
CT: control target
= control target key end

     0   :  { %vm111_vm0 = vcmask 916480   ;;  %vm338_vm1 = vcmask 1045504   ;;  %vm2855_vm2 = vmmov 1   ;;  %vm295_vm4 = vcmask 244736   ;;  %s3949_s0 = inlined_call_operand.vmem [shape: f32[112,30], index: 0, kind: input, shape index: {}]   ;;  %s3950_s1 = inlined_call_operand.vmem [shape: f32[112,112], index: 1, kind: input, shape index: {}]   ;;  %s3951_s3 = inlined_call_operand.vmem [shape: f32[30,30], index: 3, kind: input, shape index: {}]   ;;  %s3952_s4 = inlined_call_operand.vmem [shape: f32[1,30], index: 4, kind: input, shape index: {}]   ;;  %s3953_s5 = inlined_call_operand.vmem [shape: f32[1,30], index: 5, kind: input, shape index: {}]   ;;  %s3954_s6 = inlined_call_operand.vmem [shape: f32[1,30], index: 6, kind: input, shape index: {}]   ;;  %s3955_s2 = inlined_call_operand.vmem [shape: f32[16,112], index: 2, kind: input, shape index: {}]   ;;  %s3956_s7 = inlined_call_operand.vmem [shape: f32[30,256], index: 7, kind: input, shape index: {}]   ;;  %s3957_s9 = inlined_call_operand.vmem [shape: f32[256,128], index: 9, kind: input, shape index: {}]   ;;  %s3958_s8 = inlined_call_operand.vmem [shape: f32[1,256], index: 8, kind: input, shape index: {}]   ;;  %s3959_s17 = inlined_call_operand.vmem [shape: f32[1,256], index: 17, kind: input, shape index: {}]   ;;  %s3960_s18 = inlined_call_operand.vmem [shape: f32[1,256], index: 18, kind: input, shape index: {}]   ;;  %s3961_s11 = inlined_call_operand.vmem [shape: f32[128,64], index: 11, kind: input, shape index: {}]   ;;  %s3962_s10 = inlined_call_operand.vmem [shape: f32[1,128], index: 10, kind: input, shape index: {}]   ;;  %s3963_s19 = inlined_call_operand.vmem [shape: f32[1,128], index: 19, kind: input, shape index: {}]   ;;  %s3964_s20 = inlined_call_operand.vmem [shape: f32[1,128], index: 20, kind: input, shape index: {}]   ;;  %s3965_s13 = inlined_call_operand.vmem [shape: f32[128,64], index: 13, kind: input, shape index: {}]   ;;  %s3966_s12 = inlined_call_operand.vmem [shape: f32[1,64], index: 12, kind: input, shape index: {}]   ;;  %s3967_s21 = inlined_call_operand.vmem [shape: f32[1,64], index: 21, kind: input, shape index: {}]   ;;  %s3968_s22 = inlined_call_operand.vmem [shape: f32[1,64], index: 22, kind: input, shape index: {}]   ;;  %s3969_s15 = inlined_call_operand.vmem [shape: f32[64,2], index: 15, kind: input, shape index: {}]   ;;  %s3970_s14 = inlined_call_operand.vmem [shape: f32[1,64], index: 14, kind: input, shape index: {}]   ;;  %s3971_s16 = inlined_call_operand.vmem [shape: f32[1,2], index: 16, kind: input, shape index: {}]   ;;  %s3972_s23 = inlined_call_operand.vmem [shape: f32[8,2], index: 23, kind: output, shape index: {}]  }
   0x1   :  { %3978 = sst [smem:[#allocation2_spill]] %s3949_s0  ;;  %vm3028_vm3 = vmpackc.low %vm338_vm1, %vm2855_vm2  ;;  %v1459_v21 = vld [vmem:[%s3957_s9 + $0x88] sm:$0xff]  ;;  %vm2858_vm5 = vmmov 0   ;;  %vm1716_vm6 = vcmask 523264   ;;  %vm2057_vm7 = vcmask 15360  }
   0x2   :  { %3979 = sst [smem:[#allocation3_spill]] %s3950_s1  ;;  %s3986_s24 = sld [smem:[#allocation2_spill]] }
   0x3   :  { %3980 = sst [smem:[#allocation4_spill]] %s3951_s3 }
   0x4   :  { %3981 = sst [smem:[#allocation5_spill]] %s3952_s4 }
   0x5   :  { %3982 = sst [smem:[#allocation6_spill]] %s3953_s5  ;;  %s3987_s5 = sld [smem:[#allocation3_spill]] }
   0x6   :  { %3983 = sst [smem:[#allocation7_spill]] %s3954_s6  ;;  %s3991_s4 = sld [smem:[#allocation5_spill]] }
   0x7   :  { %3984 = sst [smem:[#allocation8_spill]] %s3955_s2  ;;  %s3992_s25 = sld [smem:[#allocation6_spill]] }
   0x8   :  { %3985 = sst [smem:[#allocation9_spill]] %s3956_s7  ;;  %v74_v0 = vld [vmem:[%s3986_s24] sm:$0xff]  ;;  %v75_v1 = vld [vmem:[%s3986_s24 + $0x8] sm:$0xff]  ;;  %v76_v2 = vld [vmem:[%s3986_s24 + $0x10] sm:$0xff]  ;;  %s3988_s7 = sld [smem:[#allocation4_spill]] }
   0x9   :  { %v2611_v3 = vpack.c.bf16 %v75_v1, %v74_v0  ;;  %v77_v4 = vld [vmem:[%s3986_s24 + $0x18] sm:$0xff]  ;;  %v78_v6 = vld [vmem:[%s3986_s24 + $0x20] sm:$0xff]  ;;  %v79_v7 = vld [vmem:[%s3986_s24 + $0x28] sm:$0xff]  ;;  %s3993_s1 = sld [smem:[#allocation7_spill]]  ;;  %s3994_s3 = sld [smem:[#allocation8_spill]] }
   0xa   :  { %v2615_v5 = vpack.c.bf16 %v77_v4, %v76_v2  ;;  %v2619_v9 = vpack.c.bf16 %v79_v7, %v78_v6  ;;  %v80_v10 = vld [vmem:[%s3986_s24 + $0x30] sm:$0xff]  ;;  %v81_v11 = vld [vmem:[%s3986_s24 + $0x38] sm:$0xff]  ;;  %v82_v13 = vld [vmem:[%s3986_s24 + $0x40] sm:$0xff]  ;;  %s3995_s28 = sld [smem:[#allocation9_spill]] }
   0xb   :  { %2612 = vmatprep.subr.bf16.mxu0 %v2611_v3  ;;  %v3000_v8 = vld [vmem:[%s3987_s5] sm:$0xff]  ;;  %v2623_v12 = vpack.c.bf16 %v81_v11, %v80_v10  ;;  %v83_v16 = vld [vmem:[%s3986_s24 + $0x48] sm:$0xff]  ;;  %v84_v23 = vld [vmem:[%s3986_s24 + $0x50] sm:$0xff] }
   0xc   :  { %2614 = vmatpush3.bf16.msra.mxu0 %v2611_v3  ;;  %2360 = vmatprep.mubr.msk.f32.mxu0 %vm111_vm0, %v3000_v8  ;;  %v2627_v22 = vpack.c.bf16 %v83_v16, %v82_v13  ;;  %v85_v24 = vld [vmem:[%s3986_s24 + $0x58] sm:$0xff]  ;;  %v86_v26 = vld [vmem:[%s3986_s24 + $0x60] sm:$0xff]  ;;  %v87_v27 = vld [vmem:[%s3986_s24 + $0x68] sm:$0xff] }
   0xd   :  { %2616 = vmatprep.subr.bf16.mxu0 %v2615_v5  ;;  %v2631_v25 = vpack.c.bf16 %v85_v24, %v84_v23  ;;  %v2635_v28 = vpack.c.bf16 %v87_v27, %v86_v26  ;;  %v3051_v29 = vld [vmem:[%s3987_s5 + $0x8] sm:$0xff]  ;;  %v3056_v30 = vld [vmem:[%s3987_s5 + $0x10] sm:$0xff]  ;;  %v3065_v31 = vld [vmem:[%s3987_s5 + $0x18] sm:$0xff] }
   0xe   :  { %v104_v14 = vld [vmem:[%s3988_s7] sm:$0xff]  ;;  %v105_v15 = vld [vmem:[%s3988_s7 + $0x8] sm:$0xff]  ;;  %v106_v18 = vld [vmem:[%s3988_s7 + $0x10] sm:$0xff] }
   0xf   :  { %v2639_v17 = vpack.c.bf16 %v105_v15, %v104_v14  ;;  %v107_v19 = vld [vmem:[%s3988_s7 + $0x18] sm:$0x3f]  ;;  %v3070_v32 = vld [vmem:[%s3987_s5 + $0x20] sm:$0xff]  ;;  %v3081_v33 = vld [vmem:[%s3987_s5 + $0x28] sm:$0xff] }
  0x10   :  { %2618 = vmatpush3.bf16.msra.mxu0 %v2615_v5  ;;  %v2643_v20 = vpack.c.bf16 %v107_v19, %v106_v18  ;;  %v3088_v34 = vld [vmem:[%s3987_s5 + $0x30] sm:$0xff]  ;;  %v3097_v35 = vld [vmem:[%s3987_s5 + $0x38] sm:$0xff]  ;;  %v3102_v36 = vld [vmem:[%s3987_s5 + $0x40] sm:$0xff] }
  0x11   :  { %2620 = vmatprep.subr.bf16.mxu0 %v2619_v9  ;;  %2640 = vmatprep.subr.bf16.mxu1 %v2639_v17  ;;  %v3111_v37 = vld [vmem:[%s3987_s5 + $0x48] sm:$0xff]  ;;  %v3116_v38 = vld [vmem:[%s3987_s5 + $0x50] sm:$0xff]  ;;  %v3125_v39 = vld [vmem:[%s3987_s5 + $0x58] sm:$0xff] }
  0x12   :  { %2642 = vmatpush3.bf16.msra.mxu1 %v2639_v17  ;;  %v3130_v40 = vld [vmem:[%s3987_s5 + $0x60] sm:$0xff]  ;;  %v3139_v41 = vld [vmem:[%s3987_s5 + $0x68] sm:$0xff] }
  0x13   :  { %2645 = vmatprep.subr.msk.bf16.mxu1 %vm3028_vm3, %v2643_v20  ;;  %v3162_v56 = vld [vmem:[%s3991_s4] ss:$0 sm:$0xff] }
  0x14   :  { %2622 = vmatpush3.bf16.msra.mxu0 %v2619_v9 }
  0x15   :  { %2624 = vmatprep.subr.bf16.mxu0 %v2623_v12 }
  0x16   :  { %2648 = vmatpush3.bf16.msk.msra.mxu1 %vm3028_vm3, %v2643_v20 }
  0x18   :  { %2626 = vmatpush3.bf16.msra.mxu0 %v2623_v12 }
  0x19   :  { %2628 = vmatprep.subr.bf16.mxu0 %v2627_v22 }
  0x1c   :  { %2630 = vmatpush3.bf16.msra.mxu0 %v2627_v22 }
  0x1d   :  { %2632 = vmatprep.subr.bf16.mxu0 %v2631_v25 }
  0x20   :  { %2634 = vmatpush3.bf16.msra.mxu0 %v2631_v25 }
  0x21   :  { %2636 = vmatprep.subr.bf16.mxu0 %v2635_v28 }
  0x24   :  { %2638 = vmatpush3.bf16.msra.mxu0 %v2635_v28 }
  0x25   :  { %2678 = vmatprep.subr.bf16.mxu0 %v2639_v17 }
  0x27   :  { %2361 = vmatmul.mubr.msk.f32.vlgmr.msra.gmra.mrb[0].mxu0 %vm111_vm0, %v3051_v29 }
  0x28   :  { %2363 = vmatprep.mubr.msk.f32.mxu0 %vm111_vm0, %v3056_v30  ;;  %2680 = vmatpush3.bf16.msra.mxu0 %v2639_v17 }
  0x29   :  { %2683 = vmatprep.subr.msk.bf16.mxu0 %vm3028_vm3, %v2643_v20 }
  0x2b   :  { %2364 = vmatmul.mubr.msk.f32.gmra.mrb[2].mxu0 %vm111_vm0, %v3065_v31 }
  0x2c   :  { %2366 = vmatprep.mubr.msk.f32.mxu0 %vm111_vm0, %v3070_v32  ;;  %2686 = vmatpush3.bf16.msk.msra.mxu0 %vm3028_vm3, %v2643_v20 }
  0x2f   :  { %2367 = vmatmul.mubr.msk.f32.gmra.mrb[4].mxu0 %vm111_vm0, %v3081_v33 }
  0x30   :  { %2369 = vmatprep.mubr.msk.f32.mxu0 %vm111_vm0, %v3088_v34 }
  0x33   :  { %2370 = vmatmul.mubr.msk.f32.gmra.mrb[6].mxu0 %vm111_vm0, %v3097_v35 }
  0x34   :  { %2372 = vmatprep.mubr.msk.f32.mxu0 %vm111_vm0, %v3102_v36 }
  0x37   :  { %2373 = vmatmul.mubr.msk.f32.gmra.mrb[8].mxu0 %vm111_vm0, %v3111_v37 }
  0x38   :  { %2375 = vmatprep.mubr.msk.f32.mxu0 %vm111_vm0, %v3116_v38 }
  0x3b   :  { %2376 = vmatmul.mubr.msk.f32.gmra.mrb[10].mxu0 %vm111_vm0, %v3125_v39 }
  0x3c   :  { %2378 = vmatprep.mubr.msk.f32.mxu0 %vm111_vm0, %v3130_v40 }
  0x3f   :  { %2379 = vmatmul.mubr.msk.f32.gmra.mrb[12].mxu0 %vm111_vm0, %v3139_v41 }
  0xfa   :  { %v2362_v42 = vpop.f32.mrb[0].mxu0 }
  0xfb   :  { %v220_v43 = vpop.f32.mrb[1].mxu0 }
  0xfc   :  { %2389 = vmatprep.mubr.msk.f32.mxu1 %vm295_vm4, %v220_v43 }
  0xfd   :  { %2390 = vmatmul.mubr.msk.f32.vlgmr.msra.gmra.mrb[0].mxu1 %vm295_vm4, %v2362_v42 }
  0xfe   :  { %v2365_v44 = vpop.f32.mrb[2].mxu0 }
  0xff   :  { %v230_v45 = vpop.f32.mrb[3].mxu0 }
 0x100   :  { %2392 = vmatprep.mubr.msk.f32.mxu1 %vm295_vm4, %v230_v45 }
 0x101   :  { %2393 = vmatmul.mubr.msk.f32.gmra.mrb[2].mxu1 %vm295_vm4, %v2365_v44 }
 0x102   :  { %v2368_v46 = vpop.f32.mrb[4].mxu0 }
 0x103   :  { %v240_v47 = vpop.f32.mrb[5].mxu0 }
 0x104   :  { %2395 = vmatprep.mubr.msk.f32.mxu1 %vm295_vm4, %v240_v47 }
 0x105   :  { %2396 = vmatmul.mubr.msk.f32.gmra.mrb[4].mxu1 %vm295_vm4, %v2368_v46 }
 0x106   :  { %v2371_v48 = vpop.f32.mrb[6].mxu0 }
 0x107   :  { %v250_v49 = vpop.f32.mrb[7].mxu0 }
 0x108   :  { %2398 = vmatprep.mubr.msk.f32.mxu1 %vm295_vm4, %v250_v49 }
 0x109   :  { %2399 = vmatmul.mubr.msk.f32.gmra.mrb[6].mxu1 %vm295_vm4, %v2371_v48 }
 0x10a   :  { %v2374_v50 = vpop.f32.mrb[8].mxu0 }
 0x10b   :  { %v260_v51 = vpop.f32.mrb[9].mxu0 }
 0x10c   :  { %2401 = vmatprep.mubr.msk.f32.mxu1 %vm295_vm4, %v260_v51 }
 0x10d   :  { %2402 = vmatmul.mubr.msk.f32.gmra.mrb[8].mxu1 %vm295_vm4, %v2374_v50 }
 0x10e   :  { %v2377_v52 = vpop.f32.mrb[10].mxu0 }
 0x10f   :  { %v270_v53 = vpop.f32.mrb[11].mxu0 }
 0x110   :  { %2404 = vmatprep.mubr.msk.f32.mxu1 %vm295_vm4, %v270_v53 }
 0x111   :  { %2405 = vmatmul.mubr.msk.f32.gmra.mrb[10].mxu1 %vm295_vm4, %v2377_v52 }
 0x112   :  { %v2380_v54 = vpop.f32.mrb[12].mxu0 }
 0x113   :  { %v280_v55 = vpop.f32.mrb[13].mxu0 }
 0x114   :  { %2407 = vmatprep.mubr.msk.f32.mxu1 %vm295_vm4, %v280_v55 }
 0x115   :  { %2408 = vmatmul.mubr.msk.f32.gmra.mrb[12].mxu1 %vm295_vm4, %v2380_v54 }
 0x116   :  { %2438 = vmatprep.mubr.msk.f32.mxu1 %vm111_vm0, %v3000_v8 }
 0x1d0   :  { %v2391_v57 = vpop.f32.mrb[0].mxu1 }
 0x1d1   :  { %v3165_v58 = vadd.f32 %v2391_v57, %v3162_v56  ;;  %v408_v59 = vpop.f32.mrb[1].mxu1 }
 0x1d2   :  { %v3168_v60 = vadd.f32 %v3162_v56, %v408_v59 }
 0x1d3   :  { %v478_v61 = vmax.f32 %v3165_v58, 0.0 }
 0x1d4   :  { %v477_v62 = vmax.f32 %v3168_v60, 0.0  ;;  %v2394_v63 = vpop.f32.mrb[2].mxu1 }
 0x1d5   :  { %v492_v0 = vsel %vm295_vm4, %v478_v61, 0.0  ;;  %v3176_v1 = vadd.f32 %v2394_v63, %v3162_v56  ;;  %v418_v2 = vpop.f32.mrb[3].mxu1 }
 0x1d6   :  { %v491_v3 = vsel %vm295_vm4, %v477_v62, 0.0  ;;  %v3182_v4 = vadd.f32 %v3162_v56, %v418_v2 }
 0x1d7   :  { %v493_v5 = vadd.f32 %v492_v0, %v491_v3  ;;  %v480_v6 = vmax.f32 %v3176_v1, 0.0 }
 0x1d8   :  { %v479_v7 = vmax.f32 %v3182_v4, 0.0  ;;  %v2397_v8 = vpop.f32.mrb[4].mxu1 }
 0x1d9   :  { %v3187_v9 = vadd.f32 %v2397_v8, %v3162_v56  ;;  %v428_v10 = vpop.f32.mrb[5].mxu1  ;;  %v496_v14 = vsel %vm295_vm4, %v480_v6, 0.0 }
 0x1da   :  { %v494_v11 = vsel %vm295_vm4, %v479_v7, 0.0  ;;  %v429_v12 = vadd.f32 %v3162_v56, %v428_v10 }
 0x1db   :  { %v495_v13 = vadd.f32 %v494_v11, %v493_v5  ;;  %v482_v15 = vmax.f32 %v3187_v9, 0.0 }
 0x1dc   :  { %v481_v16 = vmax.f32 %v429_v12, 0.0  ;;  %v2400_v17 = vpop.f32.mrb[6].mxu1 }
 0x1dd   :  { %v497_v18 = vadd.f32 %v496_v14, %v495_v13  ;;  %v444_v19 = vadd.f32 %v2400_v17, %v3162_v56  ;;  %v438_v20 = vpop.f32.mrb[7].mxu1  ;;  %v500_v25 = vsel %vm295_vm4, %v482_v15, 0.0 }
 0x1de   :  { %v498_v22 = vsel %vm295_vm4, %v481_v16, 0.0  ;;  %v439_v23 = vadd.f32 %v3162_v56, %v438_v20 }
 0x1df   :  { %v499_v24 = vadd.f32 %v498_v22, %v497_v18  ;;  %v484_v26 = vmax.f32 %v444_v19, 0.0 }
 0x1e0   :  { %v483_v27 = vmax.f32 %v439_v23, 0.0  ;;  %v2403_v28 = vpop.f32.mrb[8].mxu1 }
 0x1e1   :  { %v501_v42 = vadd.f32 %v500_v25, %v499_v24  ;;  %v3202_v43 = vadd.f32 %v2403_v28, %v3162_v56  ;;  %v448_v44 = vpop.f32.mrb[9].mxu1  ;;  %v504_v49 = vsel %vm295_vm4, %v484_v26, 0.0 }
 0x1e2   :  { %v502_v45 = vsel %vm295_vm4, %v483_v27, 0.0  ;;  %v3206_v46 = vadd.f32 %v3162_v56, %v448_v44 }
 0x1e3   :  { %v503_v47 = vadd.f32 %v502_v45, %v501_v42  ;;  %v486_v48 = vmax.f32 %v3202_v43, 0.0 }
 0x1e4   :  { %v485_v50 = vmax.f32 %v3206_v46, 0.0  ;;  %v2406_v51 = vpop.f32.mrb[10].mxu1 }
 0x1e5   :  { %v505_v52 = vadd.f32 %v504_v49, %v503_v47  ;;  %v563_v53 = vsel %vm295_vm4, %v486_v48, 0.0  ;;  %v3215_v54 = vadd.f32 %v2406_v51, %v3162_v56  ;;  %v458_v55 = vpop.f32.mrb[11].mxu1 }
 0x1e6   :  { %v562_v57 = vsel %vm295_vm4, %v485_v50, 0.0  ;;  %v3221_v59 = vadd.f32 %v3162_v56, %v458_v55 }
 0x1e7   :  { %v506_v63 = vrot.slane %v505_v52, 4  ;;  %v564_v0 = vadd.f32 %v563_v53, %v562_v57  ;;  %v488_v2 = vmax.f32 %v3215_v54, 0.0 }
 0x1e8   :  { %v487_v3 = vmax.f32 %v3221_v59, 0.0  ;;  %v2409_v5 = vpop.f32.mrb[12].mxu1 }
 0x1e9   :  { %v507_v8 = vadd.f32 %v506_v63, %v505_v52  ;;  %v3226_v9 = vadd.f32 %v2409_v5, %v3162_v56  ;;  %v468_v10 = vpop.f32.mrb[13].mxu1  ;;  %v567_v11 = vsel %vm295_vm4, %v488_v2, 0.0 }
 0x1ea   :  { %v565_v12 = vsel %vm295_vm4, %v487_v3, 0.0  ;;  %v469_v13 = vadd.f32 %v3162_v56, %v468_v10 }
 0x1eb   :  { %v508_v14 = vrot.slane %v507_v8, 2  ;;  %v566_v17 = vadd.f32 %v565_v12, %v564_v0  ;;  %v490_v18 = vmax.f32 %v3226_v9, 0.0 }
 0x1ec   :  { %v489_v19 = vmax.f32 %v469_v13, 0.0 }
 0x1ed   :  { %v509_v20 = vadd.f32 %v508_v14, %v507_v8  ;;  %v568_v22 = vadd.f32 %v567_v11, %v566_v17  ;;  %v571_v23 = vsel %vm295_vm4, %v490_v18, 0.0 }
 0x1ee   :  { %v569_v24 = vsel %vm295_vm4, %v489_v19, 0.0 }
 0x1ef   :  { %v510_v25 = vrot.slane %v509_v20, 1  ;;  %v570_v28 = vadd.f32 %v569_v24, %v568_v22 }
 0x1f1   :  { %v511_v42 = vadd.f32 %v510_v25, %v509_v20  ;;  %v572_v44 = vadd.f32 %v571_v23, %v570_v28 }
 0x1f3   :  { %v513_v45 = vmul.f32 0.015625, %v511_v42  ;;  %v573_v1 = vrot.slane %v572_v44, 4 }
 0x1f5   :  { %v3238_v47 = vsub.f32 %v477_v62, %v513_v45  ;;  %v3242_v49 = vsub.f32 %v478_v61, %v513_v45  ;;  %v3246_v51 = vsub.f32 %v479_v7, %v513_v45  ;;  %v3250_v52 = vsub.f32 %v480_v6, %v513_v45 }
 0x1f6   :  { %v3252_v53 = vsub.f32 %v481_v16, %v513_v45  ;;  %v3254_v55 = vsub.f32 %v482_v15, %v513_v45  ;;  %v3256_v57 = vsub.f32 %v483_v27, %v513_v45  ;;  %v3258_v60 = vsub.f32 %v484_v26, %v513_v45 }
 0x1f7   :  { %v522_v58 = vmul.f32 %v3238_v47, %v3238_v47  ;;  %v523_v61 = vmul.f32 %v3242_v49, %v3242_v49  ;;  %v524_v62 = vmul.f32 %v3246_v51, %v3246_v51  ;;  %v525_v4 = vmul.f32 %v3250_v52, %v3250_v52 }
 0x1f8   :  { %v526_v16 = vmul.f32 %v3252_v53, %v3252_v53  ;;  %v574_v27 = vadd.f32 %v573_v1, %v572_v44  ;;  %v527_v63 = vmul.f32 %v3254_v55, %v3254_v55  ;;  %v528_v9 = vmul.f32 %v3256_v57, %v3256_v57 }
 0x1f9   :  { %v530_v6 = vsel %vm295_vm4, %v522_v58, 0.0  ;;  %v531_v7 = vsel %vm295_vm4, %v523_v61, 0.0  ;;  %v533_v26 = vsel %vm295_vm4, %v524_v62, 0.0  ;;  %v535_v0 = vsel %vm295_vm4, %v525_v4, 0.0 }
 0x1fa   :  { %v532_v15 = vadd.f32 %v531_v7, %v530_v6  ;;  %v575_v5 = vrot.slane %v574_v27, 2  ;;  %v537_v10 = vsel %vm295_vm4, %v526_v16, 0.0  ;;  %v529_v13 = vmul.f32 %v3258_v60, %v3258_v60 }
 0x1fb   :  { %v539_v14 = vsel %vm295_vm4, %v527_v63, 0.0  ;;  %v541_v22 = vsel %vm295_vm4, %v528_v9, 0.0 }
 0x1fc   :  { %v534_v59 = vadd.f32 %v533_v26, %v532_v15  ;;  %v576_v11 = vadd.f32 %v575_v5, %v574_v27  ;;  %v543_v25 = vsel %vm295_vm4, %v529_v13, 0.0 }
 0x1fe   :  { %v536_v8 = vadd.f32 %v535_v0, %v534_v59  ;;  %v577_v17 = vrot.slane %v576_v11, 1 }
 0x200   :  { %v538_v12 = vadd.f32 %v537_v10, %v536_v8  ;;  %v578_v23 = vadd.f32 %v577_v17, %v576_v11 }
 0x202   :  { %v540_v20 = vadd.f32 %v539_v14, %v538_v12  ;;  %v580_v28 = vmul.f32 0.020833334, %v578_v23 }
 0x204   :  { %v542_v24 = vadd.f32 %v541_v22, %v540_v20  ;;  %v3286_v44 = vsub.f32 %v485_v50, %v580_v28  ;;  %v3290_v45 = vsub.f32 %v486_v48, %v580_v28  ;;  %v3292_v58 = vsub.f32 %v487_v3, %v580_v28 }
 0x205   :  { %v3296_v61 = vsub.f32 %v488_v2, %v580_v28  ;;  %v3298_v1 = vsub.f32 %v489_v19, %v580_v28  ;;  %v3300_v4 = vsub.f32 %v490_v18, %v580_v28 }
 0x206   :  { %v544_v42 = vadd.f32 %v543_v25, %v542_v24  ;;  %v587_v46 = vmul.f32 %v3286_v44, %v3286_v44  ;;  %v588_v50 = vmul.f32 %v3290_v45, %v3290_v45  ;;  %v589_v43 = vmul.f32 %v3292_v58, %v3292_v58  ;;  %v3323_v25 = vld [vmem:[%s3992_s25] ss:$0 sm:$0xff] }
 0x207   :  { %v590_v54 = vmul.f32 %v3296_v61, %v3296_v61  ;;  %v591_v6 = vmul.f32 %v3298_v1, %v3298_v1  ;;  %v592_v26 = vmul.f32 %v3300_v4, %v3300_v4 }
 0x208   :  { %v545_v62 = vrot.slane %v544_v42, 4  ;;  %v593_v2 = vsel %vm295_vm4, %v587_v46, 0.0  ;;  %v594_v3 = vsel %vm295_vm4, %v588_v50, 0.0  ;;  %v596_v7 = vsel %vm295_vm4, %v589_v43, 0.0 }
 0x209   :  { %v595_v18 = vadd.f32 %v594_v3, %v593_v2  ;;  %v598_v27 = vsel %vm295_vm4, %v590_v54, 0.0  ;;  %v600_v0 = vsel %vm295_vm4, %v591_v6, 0.0  ;;  %v602_v9 = vsel %vm295_vm4, %v592_v26, 0.0 }
 0x20a   :  { %v546_v48 = vadd.f32 %v545_v62, %v544_v42 }
 0x20b   :  { %v597_v16 = vadd.f32 %v596_v7, %v595_v18 }
 0x20c   :  { %v547_v19 = vrot.slane %v546_v48, 2 }
 0x20d   :  { %v599_v63 = vadd.f32 %v598_v27, %v597_v16 }
 0x20e   :  { %v548_v15 = vadd.f32 %v547_v19, %v546_v48  ;;  %v3332_v48 = vld [vmem:[%s3993_s1] ss:$0 sm:$0xff] }
 0x20f   :  { %v601_v8 = vadd.f32 %v600_v0, %v599_v63 }
 0x210   :  { %v549_v59 = vrot.slane %v548_v15, 1 }
 0x211   :  { %v603_v11 = vadd.f32 %v602_v9, %v601_v8 }
 0x212   :  { %v550_v5 = vadd.f32 %v549_v59, %v548_v15 }
 0x213   :  { %v604_v13 = vrot.slane %v603_v11, 4 }
 0x214   :  { %v551_v10 = vmul.f32 0.015625, %v550_v5 }
 0x215   :  { %v605_v14 = vadd.f32 %v604_v13, %v603_v11 }
 0x216   :  { %v552_v12 = vadd.f32 1e-05, %v551_v10 }
 0x217   :  { %v606_v17 = vrot.slane %v605_v14, 2 }
 0x218   :  { %2829 = vrsqrt.f32 %v552_v12 }
 0x219   :  { %v607_v20 = vadd.f32 %v606_v17, %v605_v14 }
 0x21b   :  { %v608_v22 = vrot.slane %v607_v20, 1 }
 0x21d   :  { %v609_v23 = vadd.f32 %v608_v22, %v607_v20 }
 0x21f   :  { %v610_v28 = vmul.f32 0.020833334, %v609_v23 }
 0x221   :  { %v611_v43 = vadd.f32 1e-05, %v610_v28 }
 0x222   :  { %v2830_v24 = vpop.eup %2829 }
 0x223   :  { %v560_v42 = vmul.f32 %v2830_v24, %v3256_v57  ;;  %v554_v62 = vmul.f32 %v2830_v24, %v3238_v47  ;;  %v555_v46 = vmul.f32 %v2830_v24, %v3242_v49  ;;  %v556_v50 = vmul.f32 %v2830_v24, %v3246_v51 }
 0x224   :  { %v557_v54 = vmul.f32 %v2830_v24, %v3250_v52  ;;  %v558_v2 = vmul.f32 %v2830_v24, %v3252_v53  ;;  %v559_v3 = vmul.f32 %v2830_v24, %v3254_v55  ;;  %2831 = vrsqrt.f32 %v611_v43 }
 0x225   :  { %v631_v57 = vmul.f32 %v3323_v25, %v560_v42  ;;  %v625_v47 = vmul.f32 %v3323_v25, %v554_v62  ;;  %v626_v49 = vmul.f32 %v3323_v25, %v555_v46  ;;  %v627_v51 = vmul.f32 %v3323_v25, %v556_v50 }
 0x226   :  { %v628_v19 = vmul.f32 %v3323_v25, %v557_v54  ;;  %v629_v18 = vmul.f32 %v3323_v25, %v558_v2  ;;  %v630_v6 = vmul.f32 %v3323_v25, %v559_v3  ;;  %v561_v7 = vmul.f32 %v2830_v24, %v3258_v60  ;;  %v102_v54 = vld [vmem:[%s3994_s3] sm:$0xff] }
 0x227   :  { %v645_v52 = vadd.f32 %v3332_v48, %v625_v47  ;;  %v646_v53 = vadd.f32 %v3332_v48, %v626_v49  ;;  %v647_v55 = vadd.f32 %v3332_v48, %v627_v51  ;;  %v651_v63 = vadd.f32 %v3332_v48, %v631_v57 }
 0x228   :  { %v648_v15 = vadd.f32 %v3332_v48, %v628_v19  ;;  %v649_v16 = vadd.f32 %v3332_v48, %v629_v18  ;;  %v650_v26 = vadd.f32 %v3332_v48, %v630_v6  ;;  %v632_v59 = vmul.f32 %v3323_v25, %v561_v7 }
 0x229   :  { %v2649_v27 = vpack.c.bf16 %v646_v53, %v645_v52 }
 0x22a   :  { %v2653_v0 = vpack.c.bf16 %v648_v15, %v647_v55  ;;  %v2657_v5 = vpack.c.bf16 %v650_v26, %v649_v16  ;;  %v652_v8 = vadd.f32 %v3332_v48, %v632_v59 }
 0x22b   :  { %2650 = vmatprep.subr.bf16.mxu1 %v2649_v27 }
 0x22c   :  { %2652 = vmatpush3.bf16.msra.mxu1 %v2649_v27  ;;  %v2661_v9 = vpack.c.bf16 %v652_v8, %v651_v63 }
 0x22d   :  { %2654 = vmatprep.subr.bf16.mxu1 %v2653_v0 }
 0x22e   :  { %v2832_v60 = vpop.eup %2831 }
 0x22f   :  { %v617_v10 = vmul.f32 %v2832_v60, %v3298_v1  ;;  %v613_v11 = vmul.f32 %v2832_v60, %v3286_v44  ;;  %v614_v12 = vmul.f32 %v2832_v60, %v3290_v45  ;;  %v615_v13 = vmul.f32 %v2832_v60, %v3292_v58 }
 0x230   :  { %2656 = vmatpush3.bf16.msra.mxu1 %v2653_v0  ;;  %v616_v14 = vmul.f32 %v2832_v60, %v3296_v61  ;;  %v618_v17 = vmul.f32 %v2832_v60, %v3300_v4 }
 0x231   :  { %2658 = vmatprep.subr.bf16.mxu1 %v2657_v5  ;;  %v637_v20 = vmul.f32 %v3323_v25, %v617_v10  ;;  %v633_v22 = vmul.f32 %v3323_v25, %v613_v11  ;;  %v634_v23 = vmul.f32 %v3323_v25, %v614_v12  ;;  %v635_v24 = vmul.f32 %v3323_v25, %v615_v13 }
 0x232   :  { %v636_v1 = vmul.f32 %v3323_v25, %v616_v14  ;;  %v638_v44 = vmul.f32 %v3323_v25, %v618_v17 }
 0x233   :  { %v653_v45 = vadd.f32 %v3332_v48, %v633_v22  ;;  %v654_v58 = vadd.f32 %v3332_v48, %v634_v23  ;;  %v655_v61 = vadd.f32 %v3332_v48, %v635_v24  ;;  %v657_v4 = vadd.f32 %v3332_v48, %v637_v20 }
 0x234   :  { %2660 = vmatpush3.bf16.msra.mxu1 %v2657_v5  ;;  %v656_v28 = vadd.f32 %v3332_v48, %v636_v1  ;;  %v658_v42 = vadd.f32 %v3332_v48, %v638_v44 }
 0x235   :  { %2662 = vmatprep.subr.bf16.mxu1 %v2661_v9  ;;  %v2665_v62 = vpack.c.bf16 %v654_v58, %v653_v45 }
 0x236   :  { %v2669_v46 = vpack.c.bf16 %v656_v28, %v655_v61  ;;  %v2673_v50 = vpack.c.bf16 %v658_v42, %v657_v4 }
 0x238   :  { %2664 = vmatpush3.bf16.msra.mxu1 %v2661_v9 }
 0x239   :  { %2666 = vmatprep.subr.bf16.mxu1 %v2665_v62 }
 0x23c   :  { %2668 = vmatpush3.bf16.msra.mxu1 %v2665_v62 }
 0x23d   :  { %2670 = vmatprep.subr.bf16.mxu1 %v2669_v46 }
 0x240   :  { %2672 = vmatpush3.bf16.msra.mxu1 %v2669_v46 }
 0x241   :  { %2674 = vmatprep.subr.bf16.mxu1 %v2673_v50 }
 0x244   :  { %2676 = vmatpush3.bf16.msra.mxu1 %v2673_v50 }
 0x247   :  { %2439 = vmatmul.mubr.msk.f32.vlgmr.msra.gmra.mrb[14].mxu1 %vm111_vm0, %v3051_v29 }
 0x248   :  { %2441 = vmatprep.mubr.msk.f32.mxu1 %vm111_vm0, %v3056_v30 }
 0x24b   :  { %2442 = vmatmul.mubr.msk.f32.gmra.mrb[16].mxu1 %vm111_vm0, %v3065_v31 }
 0x24c   :  { %2444 = vmatprep.mubr.msk.f32.mxu1 %vm111_vm0, %v3070_v32 }
 0x24f   :  { %2445 = vmatmul.mubr.msk.f32.gmra.mrb[18].mxu1 %vm111_vm0, %v3081_v33 }
 0x250   :  { %2447 = vmatprep.mubr.msk.f32.mxu1 %vm111_vm0, %v3088_v34 }
 0x253   :  { %2448 = vmatmul.mubr.msk.f32.gmra.mrb[20].mxu1 %vm111_vm0, %v3097_v35 }
 0x254   :  { %2450 = vmatprep.mubr.msk.f32.mxu1 %vm111_vm0, %v3102_v36 }
 0x257   :  { %2451 = vmatmul.mubr.msk.f32.gmra.mrb[22].mxu1 %vm111_vm0, %v3111_v37 }
 0x258   :  { %2453 = vmatprep.mubr.msk.f32.mxu1 %vm111_vm0, %v3116_v38 }
 0x25b   :  { %2454 = vmatmul.mubr.msk.f32.gmra.mrb[24].mxu1 %vm111_vm0, %v3125_v39 }
 0x25c   :  { %2456 = vmatprep.mubr.msk.f32.mxu1 %vm111_vm0, %v3130_v40 }
 0x25f   :  { %2457 = vmatmul.mubr.msk.f32.gmra.mrb[26].mxu1 %vm111_vm0, %v3139_v41 }
 0x260   :  { %2516 = vmatprep.mubr.msk.f32.mxu1 %vm111_vm0, %v102_v54 }
 0x31a   :  { %v2440_v29 = vpop.f32.mrb[14].mxu1 }
 0x31b   :  { %v725_v30 = vpop.f32.mrb[15].mxu1 }
 0x31c   :  { %2467 = vmatprep.mubr.msk.f32.mxu0 %vm295_vm4, %v725_v30 }
 0x31d   :  { %2468 = vmatmul.mubr.msk.f32.vlgmr.msra.gmra.mrb[14].mxu0 %vm295_vm4, %v2440_v29 }
 0x31e   :  { %v2443_v31 = vpop.f32.mrb[16].mxu1 }
 0x31f   :  { %v735_v32 = vpop.f32.mrb[17].mxu1 }
 0x320   :  { %2470 = vmatprep.mubr.msk.f32.mxu0 %vm295_vm4, %v735_v32 }
 0x321   :  { %2471 = vmatmul.mubr.msk.f32.gmra.mrb[16].mxu0 %vm295_vm4, %v2443_v31 }
 0x322   :  { %v2446_v33 = vpop.f32.mrb[18].mxu1 }
 0x323   :  { %v745_v34 = vpop.f32.mrb[19].mxu1 }
 0x324   :  { %2473 = vmatprep.mubr.msk.f32.mxu0 %vm295_vm4, %v745_v34 }
 0x325   :  { %2474 = vmatmul.mubr.msk.f32.gmra.mrb[18].mxu0 %vm295_vm4, %v2446_v33 }
 0x326   :  { %v2449_v35 = vpop.f32.mrb[20].mxu1 }
 0x327   :  { %v755_v36 = vpop.f32.mrb[21].mxu1 }
 0x328   :  { %2476 = vmatprep.mubr.msk.f32.mxu0 %vm295_vm4, %v755_v36 }
 0x329   :  { %2477 = vmatmul.mubr.msk.f32.gmra.mrb[20].mxu0 %vm295_vm4, %v2449_v35 }
 0x32a   :  { %v2452_v37 = vpop.f32.mrb[22].mxu1 }
 0x32b   :  { %v765_v38 = vpop.f32.mrb[23].mxu1 }
 0x32c   :  { %2479 = vmatprep.mubr.msk.f32.mxu0 %vm295_vm4, %v765_v38 }
 0x32d   :  { %2480 = vmatmul.mubr.msk.f32.gmra.mrb[22].mxu0 %vm295_vm4, %v2452_v37 }
 0x32e   :  { %v2455_v39 = vpop.f32.mrb[24].mxu1 }
 0x32f   :  { %v775_v40 = vpop.f32.mrb[25].mxu1 }
 0x330   :  { %2482 = vmatprep.mubr.msk.f32.mxu0 %vm295_vm4, %v775_v40 }
 0x331   :  { %2483 = vmatmul.mubr.msk.f32.gmra.mrb[24].mxu0 %vm295_vm4, %v2455_v39 }
 0x332   :  { %v2458_v41 = vpop.f32.mrb[26].mxu1 }
 0x333   :  { %v785_v43 = vpop.f32.mrb[27].mxu1 }
 0x334   :  { %2485 = vmatprep.mubr.msk.f32.mxu0 %vm295_vm4, %v785_v43 }
 0x335   :  { %2486 = vmatmul.mubr.msk.f32.gmra.mrb[26].mxu0 %vm295_vm4, %v2458_v41 }
 0x3f0   :  { %v2469_v2 = vpop.f32.mrb[14].mxu0 }
 0x3f1   :  { %v3417_v3 = vadd.f32 %v2469_v2, %v3162_v56  ;;  %v902_v57 = vpop.f32.mrb[15].mxu0 }
 0x3f2   :  { %v3420_v47 = vadd.f32 %v3162_v56, %v902_v57 }
 0x3f3   :  { %v972_v49 = vmax.f32 %v3417_v3, 0.0 }
 0x3f4   :  { %v971_v51 = vmax.f32 %v3420_v47, 0.0  ;;  %v2472_v19 = vpop.f32.mrb[16].mxu0 }
 0x3f5   :  { %v986_v18 = vsel %vm295_vm4, %v972_v49, 0.0  ;;  %v3428_v6 = vadd.f32 %v2472_v19, %v3162_v56  ;;  %v912_v52 = vpop.f32.mrb[17].mxu0 }
 0x3f6   :  { %v985_v53 = vsel %vm295_vm4, %v971_v51, 0.0  ;;  %v3434_v55 = vadd.f32 %v3162_v56, %v912_v52 }
 0x3f7   :  { %v987_v7 = vadd.f32 %v986_v18, %v985_v53  ;;  %v974_v15 = vmax.f32 %v3428_v6, 0.0 }
 0x3f8   :  { %v973_v16 = vmax.f32 %v3434_v55, 0.0  ;;  %v2475_v26 = vpop.f32.mrb[18].mxu0 }
 0x3f9   :  { %v3439_v27 = vadd.f32 %v2475_v26, %v3162_v56  ;;  %v922_v59 = vpop.f32.mrb[19].mxu0  ;;  %v990_v8 = vsel %vm295_vm4, %v974_v15, 0.0 }
 0x3fa   :  { %v988_v63 = vsel %vm295_vm4, %v973_v16, 0.0  ;;  %v923_v0 = vadd.f32 %v3162_v56, %v922_v59 }
 0x3fb   :  { %v989_v5 = vadd.f32 %v988_v63, %v987_v7  ;;  %v976_v9 = vmax.f32 %v3439_v27, 0.0 }
 0x3fc   :  { %v975_v60 = vmax.f32 %v923_v0, 0.0  ;;  %v2478_v10 = vpop.f32.mrb[20].mxu0 }
 0x3fd   :  { %v991_v11 = vadd.f32 %v990_v8, %v989_v5  ;;  %v938_v12 = vadd.f32 %v2478_v10, %v3162_v56  ;;  %v932_v13 = vpop.f32.mrb[21].mxu0  ;;  %v994_v22 = vsel %vm295_vm4, %v976_v9, 0.0 }
 0x3fe   :  { %v992_v14 = vsel %vm295_vm4, %v975_v60, 0.0  ;;  %v933_v17 = vadd.f32 %v3162_v56, %v932_v13 }
 0x3ff   :  { %v993_v20 = vadd.f32 %v992_v14, %v991_v11  ;;  %v978_v23 = vmax.f32 %v938_v12, 0.0 }
 0x400   :  { %v977_v24 = vmax.f32 %v933_v17, 0.0  ;;  %v2481_v1 = vpop.f32.mrb[22].mxu0 }
 0x401   :  { %v995_v44 = vadd.f32 %v994_v22, %v993_v20  ;;  %v3454_v45 = vadd.f32 %v2481_v1, %v3162_v56  ;;  %v942_v58 = vpop.f32.mrb[23].mxu0  ;;  %v998_v62 = vsel %vm295_vm4, %v978_v23, 0.0 }
 0x402   :  { %v996_v61 = vsel %vm295_vm4, %v977_v24, 0.0  ;;  %v3458_v4 = vadd.f32 %v3162_v56, %v942_v58 }
 0x403   :  { %v997_v28 = vadd.f32 %v996_v61, %v995_v44  ;;  %v980_v42 = vmax.f32 %v3454_v45, 0.0 }
 0x404   :  { %v979_v46 = vmax.f32 %v3458_v4, 0.0  ;;  %v2484_v50 = vpop.f32.mrb[24].mxu0 }
 0x405   :  { %v999_v29 = vadd.f32 %v998_v62, %v997_v28  ;;  %v1056_v30 = vsel %vm295_vm4, %v980_v42, 0.0  ;;  %v3467_v31 = vadd.f32 %v2484_v50, %v3162_v56  ;;  %v952_v32 = vpop.f32.mrb[25].mxu0 }
 0x406   :  { %v1055_v33 = vsel %vm295_vm4, %v979_v46, 0.0  ;;  %v3473_v34 = vadd.f32 %v3162_v56, %v952_v32 }
 0x407   :  { %v1000_v35 = vrot.slane %v999_v29, 4  ;;  %v1057_v36 = vadd.f32 %v1056_v30, %v1055_v33  ;;  %v982_v37 = vmax.f32 %v3467_v31, 0.0 }
 0x408   :  { %v981_v38 = vmax.f32 %v3473_v34, 0.0  ;;  %v2487_v39 = vpop.f32.mrb[26].mxu0 }
 0x409   :  { %v1001_v40 = vadd.f32 %v1000_v35, %v999_v29  ;;  %v3478_v41 = vadd.f32 %v2487_v39, %v3162_v56  ;;  %v962_v43 = vpop.f32.mrb[27].mxu0  ;;  %v1060_v54 = vsel %vm295_vm4, %v982_v37, 0.0 }
 0x40a   :  { %v1058_v2 = vsel %vm295_vm4, %v981_v38, 0.0  ;;  %v963_v57 = vadd.f32 %v3162_v56, %v962_v43 }
 0x40b   :  { %v1002_v19 = vrot.slane %v1001_v40, 2  ;;  %v1059_v18 = vadd.f32 %v1058_v2, %v1057_v36  ;;  %v984_v52 = vmax.f32 %v3478_v41, 0.0 }
 0x40c   :  { %v983_v53 = vmax.f32 %v963_v57, 0.0 }
 0x40d   :  { %v1003_v7 = vadd.f32 %v1002_v19, %v1001_v40  ;;  %v1061_v26 = vadd.f32 %v1060_v54, %v1059_v18  ;;  %v1064_v27 = vsel %vm295_vm4, %v984_v52, 0.0 }
 0x40e   :  { %v1062_v59 = vsel %vm295_vm4, %v983_v53, 0.0 }
 0x40f   :  { %v1004_v63 = vrot.slane %v1003_v7, 1  ;;  %v1063_v0 = vadd.f32 %v1062_v59, %v1061_v26 }
 0x411   :  { %v1005_v5 = vadd.f32 %v1004_v63, %v1003_v7  ;;  %v1065_v8 = vadd.f32 %v1064_v27, %v1063_v0 }
 0x413   :  { %v1006_v10 = vmul.f32 0.015625, %v1005_v5  ;;  %v1066_v6 = vrot.slane %v1065_v8, 4 }
 0x415   :  { %v3490_v11 = vsub.f32 %v971_v51, %v1006_v10  ;;  %v3494_v56 = vsub.f32 %v972_v49, %v1006_v10  ;;  %v3498_v12 = vsub.f32 %v973_v16, %v1006_v10  ;;  %v3502_v13 = vsub.f32 %v974_v15, %v1006_v10 }
 0x416   :  { %v3504_v14 = vsub.f32 %v975_v60, %v1006_v10  ;;  %v3506_v17 = vsub.f32 %v976_v9, %v1006_v10  ;;  %v3508_v20 = vsub.f32 %v977_v24, %v1006_v10  ;;  %v3510_v47 = vsub.f32 %v978_v23, %v1006_v10 }
 0x417   :  { %v1015_v3 = vmul.f32 %v3490_v11, %v3490_v11  ;;  %v1016_v49 = vmul.f32 %v3494_v56, %v3494_v56  ;;  %v1017_v51 = vmul.f32 %v3498_v12, %v3498_v12  ;;  %v1018_v55 = vmul.f32 %v3502_v13, %v3502_v13 }
 0x418   :  { %v1019_v60 = vmul.f32 %v3504_v14, %v3504_v14  ;;  %v1067_v23 = vadd.f32 %v1066_v6, %v1065_v8  ;;  %v1020_v1 = vmul.f32 %v3506_v17, %v3506_v17  ;;  %v1021_v28 = vmul.f32 %v3508_v20, %v3508_v20 }
 0x419   :  { %v1023_v15 = vsel %vm295_vm4, %v1015_v3, 0.0  ;;  %v1024_v16 = vsel %vm295_vm4, %v1016_v49, 0.0  ;;  %v1026_v22 = vsel %vm295_vm4, %v1017_v51, 0.0  ;;  %v1028_v44 = vsel %vm295_vm4, %v1018_v55, 0.0 }
 0x41a   :  { %v1025_v9 = vadd.f32 %v1024_v16, %v1023_v15  ;;  %v1068_v58 = vrot.slane %v1067_v23, 2  ;;  %v1030_v62 = vsel %vm295_vm4, %v1019_v60, 0.0  ;;  %v1022_v30 = vmul.f32 %v3510_v47, %v3510_v47 }
 0x41b   :  { %v1032_v32 = vsel %vm295_vm4, %v1020_v1, 0.0  ;;  %v1034_v35 = vsel %vm295_vm4, %v1021_v28, 0.0 }
 0x41c   :  { %v1027_v24 = vadd.f32 %v1026_v22, %v1025_v9  ;;  %v1069_v50 = vadd.f32 %v1068_v58, %v1067_v23  ;;  %v1036_v40 = vsel %vm295_vm4, %v1022_v30, 0.0 }
 0x41e   :  { %v1029_v61 = vadd.f32 %v1028_v44, %v1027_v24  ;;  %v1070_v33 = vrot.slane %v1069_v50, 1 }
 0x420   :  { %v1031_v29 = vadd.f32 %v1030_v62, %v1029_v61  ;;  %v1071_v36 = vadd.f32 %v1070_v33, %v1069_v50 }
 0x422   :  { %v1033_v34 = vadd.f32 %v1032_v32, %v1031_v29  ;;  %v1072_v41 = vmul.f32 0.020833334, %v1071_v36 }
 0x424   :  { %v1035_v39 = vadd.f32 %v1034_v35, %v1033_v34  ;;  %v3538_v54 = vsub.f32 %v979_v46, %v1072_v41  ;;  %v3542_v2 = vsub.f32 %v980_v42, %v1072_v41  ;;  %v3544_v57 = vsub.f32 %v981_v38, %v1072_v41 }
 0x425   :  { %v3548_v19 = vsub.f32 %v982_v37, %v1072_v41  ;;  %v3550_v7 = vsub.f32 %v983_v53, %v1072_v41  ;;  %v3552_v26 = vsub.f32 %v984_v52, %v1072_v41 }
 0x426   :  { %v1037_v43 = vadd.f32 %v1036_v40, %v1035_v39  ;;  %v1079_v4 = vmul.f32 %v3538_v54, %v3538_v54  ;;  %v1080_v46 = vmul.f32 %v3542_v2, %v3542_v2  ;;  %v1081_v45 = vmul.f32 %v3544_v57, %v3544_v57 }
 0x427   :  { %v1082_v31 = vmul.f32 %v3548_v19, %v3548_v19  ;;  %v1083_v27 = vmul.f32 %v3550_v7, %v3550_v7  ;;  %v1084_v5 = vmul.f32 %v3552_v26, %v3552_v26 }
 0x428   :  { %v1038_v18 = vrot.slane %v1037_v43, 4  ;;  %v1085_v37 = vsel %vm295_vm4, %v1079_v4, 0.0  ;;  %v1086_v38 = vsel %vm295_vm4, %v1080_v46, 0.0  ;;  %v1088_v59 = vsel %vm295_vm4, %v1081_v45, 0.0 }
 0x429   :  { %v1087_v52 = vadd.f32 %v1086_v38, %v1085_v37  ;;  %v1090_v8 = vsel %vm295_vm4, %v1082_v31, 0.0  ;;  %v1092_v49 = vsel %vm295_vm4, %v1083_v27, 0.0  ;;  %v1094_v55 = vsel %vm295_vm4, %v1084_v5, 0.0 }
 0x42a   :  { %v1039_v42 = vadd.f32 %v1038_v18, %v1037_v43 }
 0x42b   :  { %v1089_v0 = vadd.f32 %v1088_v59, %v1087_v52 }
 0x42c   :  { %v1040_v53 = vrot.slane %v1039_v42, 2 }
 0x42d   :  { %v1091_v3 = vadd.f32 %v1090_v8, %v1089_v0 }
 0x42e   :  { %v1041_v63 = vadd.f32 %v1040_v53, %v1039_v42 }
 0x42f   :  { %v1093_v6 = vadd.f32 %v1092_v49, %v1091_v3 }
 0x430   :  { %v1042_v10 = vrot.slane %v1041_v63, 1 }
 0x431   :  { %v1095_v16 = vadd.f32 %v1094_v55, %v1093_v6 }
 0x432   :  { %v1043_v51 = vadd.f32 %v1042_v10, %v1041_v63 }
 0x433   :  { %v1096_v60 = vrot.slane %v1095_v16, 4 }
 0x434   :  { %v1044_v15 = vmul.f32 0.015625, %v1043_v51 }
 0x435   :  { %v1097_v22 = vadd.f32 %v1096_v60, %v1095_v16  ;;  %v1223_v16 = vld [vmem:[%s3995_s28 + $0x18] sm:$0xff]  ;;  %v1222_v60 = vld [vmem:[%s3995_s28 + $0x10] sm:$0xff] }
 0x436   :  { %v1045_v9 = vadd.f32 1e-05, %v1044_v15 }
 0x437   :  { %v1098_v23 = vrot.slane %v1097_v22, 2 }
 0x438   :  { %2833 = vrsqrt.f32 %v1045_v9 }
 0x439   :  { %v1099_v24 = vadd.f32 %v1098_v23, %v1097_v22  ;;  %v1225_v22 = vld [vmem:[%s3995_s28 + $0x28] sm:$0xff]  ;;  %v1227_v23 = vld [vmem:[%s3995_s28 + $0x38] sm:$0x3f] }
 0x43b   :  { %v1100_v1 = vrot.slane %v1099_v24, 1 }
 0x43d   :  { %v1101_v44 = vadd.f32 %v1100_v1, %v1099_v24  ;;  %v103_v24 = vld [vmem:[%s3994_s3 + $0x8] sm:$0xff] }
 0x43f   :  { %v1102_v61 = vmul.f32 0.020833334, %v1101_v44  ;;  %v2719_v44 = vpack.c.bf16 %v1227_v23, %v1225_v22 }
 0x441   :  { %v1103_v30 = vadd.f32 1e-05, %v1102_v61  ;;  %v1226_v61 = vld [vmem:[%s3995_s28 + $0x30] sm:$0x3f] }
 0x442   :  { %v2834_v58 = vpop.eup %2833 }
 0x443   :  { %v1053_v28 = vmul.f32 %v2834_v58, %v3508_v20  ;;  %v1047_v62 = vmul.f32 %v2834_v58, %v3490_v11  ;;  %v1048_v50 = vmul.f32 %v2834_v58, %v3494_v56  ;;  %v1049_v29 = vmul.f32 %v2834_v58, %v3498_v12 }
 0x444   :  { %v1050_v32 = vmul.f32 %v2834_v58, %v3502_v13  ;;  %v1051_v33 = vmul.f32 %v2834_v58, %v3504_v14  ;;  %v1052_v34 = vmul.f32 %v2834_v58, %v3506_v17  ;;  %2835 = vrsqrt.f32 %v1103_v30  ;;  %v1458_v30 = vld [vmem:[%s3957_s9 + $0x80] sm:$0xff] }
 0x445   :  { %v1117_v35 = vmul.f32 %v3323_v25, %v1053_v28  ;;  %v1111_v36 = vmul.f32 %v3323_v25, %v1047_v62  ;;  %v1112_v39 = vmul.f32 %v3323_v25, %v1048_v50  ;;  %v1113_v20 = vmul.f32 %v3323_v25, %v1049_v29 }
 0x446   :  { %v1114_v11 = vmul.f32 %v3323_v25, %v1050_v32  ;;  %v1115_v56 = vmul.f32 %v3323_v25, %v1051_v33  ;;  %v1116_v12 = vmul.f32 %v3323_v25, %v1052_v34  ;;  %v1054_v40 = vmul.f32 %v2834_v58, %v3510_v47  ;;  %v1224_v58 = vld [vmem:[%s3995_s28 + $0x20] sm:$0xff]  ;;  %v1443_v34 = vld [vmem:[%s3957_s9 + $0x8] sm:$0xff] }
 0x447   :  { %v1125_v13 = vadd.f32 %v3332_v48, %v1111_v36  ;;  %v1126_v14 = vadd.f32 %v3332_v48, %v1112_v39  ;;  %v1127_v17 = vadd.f32 %v3332_v48, %v1113_v20  ;;  %v1131_v45 = vadd.f32 %v3332_v48, %v1117_v35  ;;  %v1442_v33 = vld [vmem:[%s3957_s9] sm:$0xff]  ;;  %v1460_v36 = vld [vmem:[%s3957_s9 + $0x90] sm:$0xff]  ;;  %v1461_v39 = vld [vmem:[%s3957_s9 + $0x98] sm:$0xff] }
 0x448   :  { %v1128_v41 = vadd.f32 %v3332_v48, %v1114_v11  ;;  %v1129_v43 = vadd.f32 %v3332_v48, %v1115_v56  ;;  %v1130_v18 = vadd.f32 %v3332_v48, %v1116_v12  ;;  %v1118_v46 = vmul.f32 %v3323_v25, %v1054_v40  ;;  %v1444_v11 = vld [vmem:[%s3957_s9 + $0x10] sm:$0xff]  ;;  %v1445_v56 = vld [vmem:[%s3957_s9 + $0x18] sm:$0xff]  ;;  %v1446_v40 = vld [vmem:[%s3957_s9 + $0x20] sm:$0xff] }
 0x449   :  { %v2687_v4 = vpack.c.bf16 %v1126_v14, %v1125_v13  ;;  %v2722_v28 = vpack.c.bf16 %v1226_v61, %v1224_v58  ;;  %v2856_v62 = vmov 0.0   ;;  %v2725_v32 = vpack.c.bf16 %v1459_v21, %v1458_v30  ;;  %v1462_v13 = vld [vmem:[%s3957_s9 + $0xa0] sm:$0xff]  ;;  %v1463_v14 = vld [vmem:[%s3957_s9 + $0xa8] sm:$0xff] }
 0x44a   :  { %v2691_v42 = vpack.c.bf16 %v1128_v41, %v1127_v17  ;;  %v2695_v31 = vpack.c.bf16 %v1130_v18, %v1129_v43  ;;  %v1132_v37 = vadd.f32 %v3332_v48, %v1118_v46  ;;  %v2727_v35 = vpack.c.bf16 %v1443_v34, %v1442_v33  ;;  %v1447_v41 = vld [vmem:[%s3957_s9 + $0x28] sm:$0xff]  ;;  %v1464_v18 = vld [vmem:[%s3957_s9 + $0xb0] sm:$0xff] }
 0x44b   :  { %2688 = vmatprep.subr.bf16.mxu1 %v2687_v4  ;;  %2726 = vmatprep.subr.bf16.mxu0 %v2725_v32  ;;  %v2729_v20 = vpack.c.bf16 %v1461_v39, %v1460_v36  ;;  %v2731_v12 = vpack.c.bf16 %v1445_v56, %v1444_v11  ;;  %v2733_v17 = vpack.c.bf16 %v1463_v14, %v1462_v13 }
 0x44c   :  { %2690 = vmatpush3.bf16.msra.mxu1 %v2687_v4  ;;  %v2699_v38 = vpack.c.bf16 %v1132_v37, %v1131_v45  ;;  %2728 = vmatpush3.bf16.msra.mxu0 %v2727_v35  ;;  %v2735_v43 = vpack.c.bf16 %v1447_v41, %v1446_v40  ;;  %v1465_v4 = vld [vmem:[%s3957_s9 + $0xb8] sm:$0xff]  ;;  %v1448_v45 = vld [vmem:[%s3957_s9 + $0x30] sm:$0xff]  ;;  %v1466_v37 = vld [vmem:[%s3957_s9 + $0xc0] sm:$0xff] }
 0x44d   :  { %2692 = vmatprep.subr.bf16.mxu1 %v2691_v42  ;;  %2730 = vmatprep.subr.bf16.mxu0 %v2729_v20  ;;  %v2737_v46 = vpack.c.bf16 %v1465_v4, %v1464_v18 }
 0x44e   :  { %v2836_v47 = vpop.eup %2835 }
 0x44f   :  { %v1109_v53 = vmul.f32 %v2836_v47, %v3550_v7  ;;  %v1105_v52 = vmul.f32 %v2836_v47, %v3538_v54  ;;  %v1106_v27 = vmul.f32 %v2836_v47, %v3542_v2  ;;  %v1107_v59 = vmul.f32 %v2836_v47, %v3544_v57 }
 0x450   :  { %2694 = vmatpush3.bf16.msra.mxu1 %v2691_v42  ;;  %v1108_v63 = vmul.f32 %v2836_v47, %v3548_v19  ;;  %v1110_v0 = vmul.f32 %v2836_v47, %v3552_v26  ;;  %2732 = vmatpush3.bf16.msra.mxu0 %v2731_v12  ;;  %v1449_v42 = vld [vmem:[%s3957_s9 + $0x38] sm:$0xff] }
 0x451   :  { %2696 = vmatprep.subr.bf16.mxu1 %v2695_v31  ;;  %v1123_v5 = vmul.f32 %v3323_v25, %v1109_v53  ;;  %v1119_v8 = vmul.f32 %v3323_v25, %v1105_v52  ;;  %v1120_v10 = vmul.f32 %v3323_v25, %v1106_v27  ;;  %v1121_v3 = vmul.f32 %v3323_v25, %v1107_v59  ;;  %v1450_v53 = vld [vmem:[%s3957_s9 + $0x40] sm:$0xff]  ;;  %v1451_v52 = vld [vmem:[%s3957_s9 + $0x48] sm:$0xff]  ;;  %v1468_v59 = vld [vmem:[%s3957_s9 + $0xd0] sm:$0xff] }
 0x452   :  { %v1122_v7 = vmul.f32 %v3323_v25, %v1108_v63  ;;  %v1124_v54 = vmul.f32 %v3323_v25, %v1110_v0  ;;  %v1221_v25 = vld [vmem:[%s3995_s28 + $0x8] sm:$0xff]  ;;  %2734 = vmatprep.subr.bf16.mxu0 %v2733_v17  ;;  %v2743_v27 = vpack.c.bf16 %v1451_v52, %v1450_v53  ;;  %v1469_v63 = vld [vmem:[%s3957_s9 + $0xd8] sm:$0xff] }
 0x453   :  { %v1133_v2 = vadd.f32 %v3332_v48, %v1119_v8  ;;  %v1134_v57 = vadd.f32 %v3332_v48, %v1120_v10  ;;  %v1135_v19 = vadd.f32 %v3332_v48, %v1121_v3  ;;  %v1137_v26 = vadd.f32 %v3332_v48, %v1123_v5  ;;  %v1452_v5 = vld [vmem:[%s3957_s9 + $0x50] sm:$0xff]  ;;  %v1453_v8 = vld [vmem:[%s3957_s9 + $0x58] sm:$0xff]  ;;  %v1470_v3 = vld [vmem:[%s3957_s9 + $0xe0] sm:$0xff] }
 0x454   :  { %2698 = vmatpush3.bf16.msra.mxu1 %v2695_v31  ;;  %v1136_v49 = vadd.f32 %v3332_v48, %v1122_v7  ;;  %v1138_v51 = vadd.f32 %v3332_v48, %v1124_v54  ;;  %v2715_v9 = vpack.c.bf16 %v1223_v16, %v1221_v25  ;;  %v1220_v48 = vld [vmem:[%s3995_s28] sm:$0xff]  ;;  %2736 = vmatpush3.bf16.msra.mxu0 %v2735_v43  ;;  %v1471_v7 = vld [vmem:[%s3957_s9 + $0xe8] sm:$0xff]  ;;  %v1230_v25 = vlaneseq }
 0x455   :  { %2700 = vmatprep.subr.bf16.mxu1 %v2699_v38  ;;  %v2703_v6 = vpack.c.bf16 %v1134_v57, %v1133_v2  ;;  %v2717_v1 = vpack.c.bf16 %v1222_v60, %v1220_v48  ;;  %v2739_v31 = vpack.c.bf16 %v1449_v42, %v1448_v45  ;;  %2738 = vmatprep.subr.bf16.mxu0 %v2737_v46  ;;  %v1454_v2 = vld [vmem:[%s3957_s9 + $0x60] sm:$0xff]  ;;  %v1455_v57 = vld [vmem:[%s3957_s9 + $0x68] sm:$0xff] }
 0x456   :  { %v2707_v55 = vpack.c.bf16 %v1136_v49, %v1135_v19  ;;  %v2711_v15 = vpack.c.bf16 %v1138_v51, %v1137_v26  ;;  %v2745_v0 = vpack.c.bf16 %v1469_v63, %v1468_v59  ;;  %v2747_v10 = vpack.c.bf16 %v1453_v8, %v1452_v5  ;;  %v1472_v19 = vld [vmem:[%s3957_s9 + $0xf0] sm:$0xff]  ;;  %v1473_v49 = vld [vmem:[%s3957_s9 + $0xf8] sm:$0xff]  ;;  %v1228_v48 = vld [vmem:[%s3958_s8] sm:$0x3] }
 0x457   :  { %v2749_v54 = vpack.c.bf16 %v1471_v7, %v1470_v3  ;;  %v2751_v26 = vpack.c.bf16 %v1455_v57, %v1454_v2  ;;  %v1456_v51 = vld [vmem:[%s3957_s9 + $0x70] sm:$0xff]  ;;  %v1231_v16 = vshrl.u32 %v1230_v25, 7 }
 0x458   :  { %2702 = vmatpush3.bf16.msra.mxu1 %v2699_v38  ;;  %2740 = vmatpush3.bf16.msra.mxu0 %v2739_v31  ;;  %v1467_v38 = vld [vmem:[%s3957_s9 + $0xc8] sm:$0xff] }
 0x459   :  { %2704 = vmatprep.subr.bf16.mxu1 %v2703_v6  ;;  %v2741_v47 = vpack.c.bf16 %v1467_v38, %v1466_v37  ;;  %v3751_v60 = vsub.s32 1, %v1231_v16 }
 0x45b   :  { %2742 = vmatprep.subr.bf16.mxu0 %v2741_v47  ;;  %v1237_v23 = vrot.slane %v1228_v48, %v3751_v60 }
 0x45c   :  { %2706 = vmatpush3.bf16.msra.mxu1 %v2703_v6  ;;  %2744 = vmatpush3.bf16.msra.mxu0 %v2743_v27  ;;  %v1457_v6 = vld [vmem:[%s3957_s9 + $0x78] sm:$0xff] }
 0x45d   :  { %2708 = vmatprep.subr.bf16.mxu1 %v2707_v55  ;;  %2746 = vmatprep.subr.bf16.mxu0 %v2745_v0 }
 0x460   :  { %2710 = vmatpush3.bf16.msra.mxu1 %v2707_v55  ;;  %2748 = vmatpush3.bf16.msra.mxu0 %v2747_v10  ;;  %v2753_v55 = vpack.c.bf16 %v1473_v49, %v1472_v19 }
 0x461   :  { %2712 = vmatprep.subr.bf16.mxu1 %v2711_v15  ;;  %2750 = vmatprep.subr.bf16.mxu0 %v2749_v54 }
 0x464   :  { %2714 = vmatpush3.bf16.msra.mxu1 %v2711_v15  ;;  %2752 = vmatpush3.bf16.msra.mxu0 %v2751_v26  ;;  %v2755_v15 = vpack.c.bf16 %v1457_v6, %v1456_v51 }
 0x465   :  { %2716 = vmatprep.subr.bf16.mxu1 %v2715_v9  ;;  %2754 = vmatprep.subr.bf16.mxu0 %v2753_v55  ;;  %v3746_v9 = vsub.s32 0, %v1231_v16 }
 0x467   :  { %2517 = vmatmul.mubr.msk.f32.vlgmr.msra.gmra.mrb[28].mxu1 %vm111_vm0, %v103_v24  ;;  %v1233_v22 = vrot.slane %v1228_v48, %v3746_v9 }
 0x468   :  { %2718 = vmatpush1.bf16.msra.mxu1 %v2717_v1  ;;  %1316 = vmatprep.mubr.f32.mxu1 %v2856_v62 }
 0x469   :  { %2721 = vmatprep.subr.msk.bf16.mxu1 %vm3028_vm3, %v2719_v44  ;;  %2756 = vmatpush3.bf16.msra.mxu0 %v2755_v15 }
 0x46c   :  { %2724 = vmatpush1.bf16.msk.msra.mxu1 %vm3028_vm3, %v2722_v28 }
 0x53a   :  { %v2518_v50 = vpop.f32.mrb[28].mxu1 }
 0x53b   :  { %v1211_v29 = vpop.f32.mrb[29].mxu1 }
 0x53c   :  { %2128 = vmatmul.mubr.msk.f32.vlgmr.msra.gmra.mrb[30].mxu1 %vm295_vm4, %v1211_v29 }
 0x53d   :  { %1322 = vmatprep.mubr.f32.mxu1 %v2856_v62 }
 0x540   :  { %2129 = vmatmul.mubr.msk.f32.gmra.mrb[32].mxu1 %vm295_vm4, %v2518_v50 }
 0x60f   :  { %v1318_v24 = vpop.f32.mrb[30].mxu1 }
 0x610   :  { %v1319_v1 = vadd.f32 %v1318_v24, %v1233_v22  ;;  %v1320_v44 = vpop.f32.mrb[31].mxu1 }
 0x611   :  { %v1321_v58 = vadd.f32 %v1320_v44, %v1237_v23 }
 0x612   :  { %v1329_v61 = vmax.f32 %v1319_v1, 0.0 }
 0x613   :  { %v1330_v28 = vmax.f32 %v1321_v58, 0.0  ;;  %v1324_v50 = vpop.f32.mrb[32].mxu1 }
 0x614   :  { %v1335_v29 = vrot.slane %v1329_v61, 4  ;;  %v1325_v30 = vadd.f32 %v1324_v50, %v1233_v22  ;;  %v1326_v21 = vpop.f32.mrb[33].mxu1 }
 0x615   :  { %v1341_v32 = vrot.slane %v1330_v28, 4  ;;  %v1327_v33 = vadd.f32 %v1326_v21, %v1237_v23 }
 0x616   :  { %v1336_v34 = vadd.f32 %v1335_v29, %v1329_v61  ;;  %v1331_v35 = vmax.f32 %v1325_v30, 0.0 }
 0x617   :  { %v1342_v36 = vadd.f32 %v1341_v32, %v1330_v28  ;;  %v1332_v39 = vmax.f32 %v1327_v33, 0.0 }
 0x618   :  { %v1337_v20 = vrot.slane %v1336_v34, 2  ;;  %v1374_v11 = vrot.slane %v1331_v35, 4 }
 0x619   :  { %v1343_v56 = vrot.slane %v1342_v36, 2  ;;  %v1380_v12 = vrot.slane %v1332_v39, 4 }
 0x61a   :  { %v1338_v13 = vadd.f32 %v1337_v20, %v1336_v34  ;;  %v1375_v14 = vadd.f32 %v1374_v11, %v1331_v35 }
 0x61b   :  { %v1344_v17 = vadd.f32 %v1343_v56, %v1342_v36  ;;  %v1381_v40 = vadd.f32 %v1380_v12, %v1332_v39  ;;  %v1333_v12 = vld [vmem:[%s3959_s17] sm:$0x3] }
 0x61c   :  { %v1339_v41 = vrot.slane %v1338_v13, 1  ;;  %v1376_v43 = vrot.slane %v1375_v14, 2 }
 0x61d   :  { %v1345_v18 = vrot.slane %v1344_v17, 1  ;;  %v1382_v4 = vrot.slane %v1381_v40, 2 }
 0x61e   :  { %v1340_v46 = vadd.f32 %v1339_v41, %v1338_v13  ;;  %v1377_v45 = vadd.f32 %v1376_v43, %v1375_v14  ;;  %v1334_v13 = vld [vmem:[%s3960_s18] sm:$0x3]  ;;  %v1416_v14 = vrot.slane %v1333_v12, %v3746_v9 }
 0x61f   :  { %v1346_v42 = vadd.f32 %v1345_v18, %v1344_v17  ;;  %v1383_v31 = vadd.f32 %v1382_v4, %v1381_v40  ;;  %v1420_v40 = vrot.slane %v1333_v12, %v3751_v60  ;;  %v1435_v4 = vrot.slane %v1334_v13, %v3751_v60  ;;  %v1614_v60 = vld [vmem:[%s3961_s11] sm:$0xff] }
 0x620   :  { %v1348_v37 = vmul.f32 0.125, %v1340_v46  ;;  %v1378_v38 = vrot.slane %v1377_v45, 1 }
 0x621   :  { %v1349_v47 = vmul.f32 0.125, %v1346_v42  ;;  %v1384_v53 = vrot.slane %v1383_v31, 1 }
 0x622   :  { %v1350_v52 = vsub.f32 %v1329_v61, %v1348_v37  ;;  %v1379_v27 = vadd.f32 %v1378_v38, %v1377_v45  ;;  %v1431_v45 = vrot.slane %v1334_v13, %v3746_v9  ;;  %v1615_v9 = vld [vmem:[%s3961_s11 + $0x8] sm:$0xff] }
 0x623   :  { %v1351_v59 = vsub.f32 %v1330_v28, %v1349_v47  ;;  %v1385_v63 = vadd.f32 %v1384_v53, %v1383_v31 }
 0x624   :  { %v1352_v0 = vmul.f32 %v1350_v52, %v1350_v52  ;;  %v1386_v5 = vmul.f32 0.125, %v1379_v27 }
 0x625   :  { %v1353_v8 = vmul.f32 %v1351_v59, %v1351_v59  ;;  %v1387_v10 = vmul.f32 0.125, %v1385_v63 }
 0x626   :  { %v1354_v3 = vrot.slane %v1352_v0, 4  ;;  %v1388_v7 = vsub.f32 %v1331_v35, %v1386_v5 }
 0x627   :  { %v1360_v54 = vrot.slane %v1353_v8, 4  ;;  %v1389_v2 = vsub.f32 %v1332_v39, %v1387_v10  ;;  %v1617_v10 = vld [vmem:[%s3961_s11 + $0x18] sm:$0xff] }
 0x628   :  { %v1355_v57 = vadd.f32 %v1354_v3, %v1352_v0  ;;  %v1390_v19 = vmul.f32 %v1388_v7, %v1388_v7 }
 0x629   :  { %v1361_v26 = vadd.f32 %v1360_v54, %v1353_v8  ;;  %v1391_v49 = vmul.f32 %v1389_v2, %v1389_v2  ;;  %v1619_v54 = vld [vmem:[%s3961_s11 + $0x28] sm:$0xff] }
 0x62a   :  { %v1356_v51 = vrot.slane %v1355_v57, 2  ;;  %v1392_v6 = vrot.slane %v1390_v19, 4 }
 0x62b   :  { %v1362_v55 = vrot.slane %v1361_v26, 2  ;;  %v1398_v15 = vrot.slane %v1391_v49, 4 }
 0x62c   :  { %v1357_v25 = vadd.f32 %v1356_v51, %v1355_v57  ;;  %v1393_v16 = vadd.f32 %v1392_v6, %v1390_v19  ;;  %v1620_v57 = vld [vmem:[%s3961_s11 + $0x30] sm:$0xff]  ;;  %v1621_v19 = vld [vmem:[%s3961_s11 + $0x38] sm:$0xff]  ;;  %v1623_v51 = vld [vmem:[%s3961_s11 + $0x48] sm:$0xff] }
 0x62d   :  { %v1363_v48 = vadd.f32 %v1362_v55, %v1361_v26  ;;  %v1399_v22 = vadd.f32 %v1398_v15, %v1391_v49  ;;  %v2769_v26 = vpack.c.bf16 %v1621_v19, %v1620_v57  ;;  %v1622_v49 = vld [vmem:[%s3961_s11 + $0x40] sm:$0xff]  ;;  %v1624_v55 = vld [vmem:[%s3961_s11 + $0x50] sm:$0xff]  ;;  %v1625_v15 = vld [vmem:[%s3961_s11 + $0x58] sm:$0xff] }
 0x62e   :  { %v1358_v23 = vrot.slane %v1357_v25, 1  ;;  %v1394_v24 = vrot.slane %v1393_v16, 2  ;;  %v2773_v6 = vpack.c.bf16 %v1623_v51, %v1622_v49  ;;  %v2132_v57 = vld [vmem:[%s3964_s20] ss:$0 sm:$0xff] }
 0x62f   :  { %v1364_v1 = vrot.slane %v1363_v48, 1  ;;  %v1400_v44 = vrot.slane %v1399_v22, 2 }
 0x630   :  { %v1359_v58 = vadd.f32 %v1358_v23, %v1357_v25  ;;  %v1395_v61 = vadd.f32 %v1394_v24, %v1393_v16  ;;  %v2777_v25 = vpack.c.bf16 %v1625_v15, %v1624_v55  ;;  %v1626_v16 = vld [vmem:[%s3961_s11 + $0x60] sm:$0xff]  ;;  %v1629_v24 = vld [vmem:[%s3961_s11 + $0x78] sm:$0xff] }
 0x631   :  { %v1365_v28 = vadd.f32 %v1364_v1, %v1363_v48  ;;  %v1401_v50 = vadd.f32 %v1400_v44, %v1399_v22  ;;  %v1627_v48 = vld [vmem:[%s3961_s11 + $0x68] sm:$0xff]  ;;  %v1628_v22 = vld [vmem:[%s3961_s11 + $0x70] sm:$0xff]  ;;  %v1783_v15 = vld [vmem:[%s3965_s13 + $0x40] sm:$0xff] }
 0x632   :  { %v1366_v29 = vmul.f32 0.125, %v1359_v58  ;;  %v1396_v30 = vrot.slane %v1395_v61, 1  ;;  %v2781_v23 = vpack.c.bf16 %v1627_v48, %v1626_v16  ;;  %v2785_v1 = vpack.c.bf16 %v1629_v24, %v1628_v22  ;;  %v2130_v58 = vld [vmem:[%s3962_s10] ss:$0 sm:$0xff]  ;;  %v1785_v22 = vld [vmem:[%s3965_s13 + $0x50] sm:$0xff] }
 0x633   :  { %v1367_v21 = vmul.f32 0.125, %v1365_v28  ;;  %v1402_v32 = vrot.slane %v1401_v50, 1  ;;  %v2857_v48 = vmov 0.0|0.0  }
 0x634   :  { %v1368_v33 = vadd.f32 1e-05, %v1366_v29  ;;  %v1397_v34 = vadd.f32 %v1396_v30, %v1395_v61  ;;  %2789 = vmatprep.subr.bf16.mxu0 %v2857_v48 }
 0x635   :  { %v1369_v35 = vadd.f32 1e-05, %v1367_v21  ;;  %v1403_v36 = vadd.f32 %v1402_v32, %v1401_v50 }
 0x636   :  { %2837 = vrsqrt.f32 %v1368_v33  ;;  %v1404_v39 = vmul.f32 0.125, %v1397_v34 }
 0x637   :  { %2839 = vrsqrt.f32 %v1369_v35  ;;  %v1405_v20 = vmul.f32 0.125, %v1403_v36 }
 0x638   :  { %v1406_v11 = vadd.f32 1e-05, %v1404_v39 }
 0x639   :  { %v1407_v56 = vadd.f32 1e-05, %v1405_v20 }
 0x63a   :  { %2841 = vrsqrt.f32 %v1406_v11 }
 0x63b   :  { %2843 = vrsqrt.f32 %v1407_v56 }
 0x640   :  { %v2838_v17 = vpop.eup %2837 }
 0x641   :  { %v2840_v41 = vpop.eup %2839  ;;  %v1372_v43 = vmul.f32 %v2838_v17, %v1350_v52  ;;  %v2757_v52 = vpack.c.bf16 %v1615_v9, %v1614_v60 }
 0x642   :  { %v1373_v18 = vmul.f32 %v2840_v41, %v1351_v59  ;;  %v1616_v59 = vld [vmem:[%s3961_s11 + $0x10] sm:$0xff] }
 0x643   :  { %v1423_v46 = vmul.f32 %v1416_v14, %v1372_v43  ;;  %2758 = vmatprep.subr.bf16.mxu1 %v2757_v52  ;;  %v2761_v3 = vpack.c.bf16 %v1617_v10, %v1616_v59 }
 0x644   :  { %v2842_v42 = vpop.eup %2841  ;;  %v1424_v31 = vmul.f32 %v1420_v40, %v1373_v18  ;;  %2760 = vmatpush3.bf16.msra.mxu1 %v2757_v52 }
 0x645   :  { %v2844_v37 = vpop.eup %2843  ;;  %v1410_v38 = vmul.f32 %v2842_v42, %v1388_v7  ;;  %v1438_v27 = vadd.f32 %v1431_v45, %v1423_v46  ;;  %2762 = vmatprep.subr.bf16.mxu1 %v2761_v3  ;;  %v1618_v7 = vld [vmem:[%s3961_s11 + $0x20] sm:$0xff] }
 0x646   :  { %v1411_v47 = vmul.f32 %v2844_v37, %v1389_v2  ;;  %v1439_v53 = vadd.f32 %v1435_v4, %v1424_v31  ;;  %v2765_v2 = vpack.c.bf16 %v1619_v54, %v1618_v7  ;;  %v2131_v54 = vld [vmem:[%s3963_s19] ss:$0 sm:$0xff] }
 0x647   :  { %v1425_v63 = vmul.f32 %v1416_v14, %v1410_v38 }
 0x648   :  { %1545 = vmatprep.mubr.f32.mxu0 %v1439_v53  ;;  %v1426_v0 = vmul.f32 %v1420_v40, %v1411_v47  ;;  %2764 = vmatpush3.bf16.msra.mxu1 %v2761_v3 }
 0x649   :  { %1546 = vmatmul.mubr.f32.vlgmr.msra.gmra.mrb[28].mxu0 %v1438_v27  ;;  %v1440_v8 = vadd.f32 %v1431_v45, %v1425_v63  ;;  %2766 = vmatprep.subr.bf16.mxu1 %v2765_v2 }
 0x64a   :  { %v1441_v5 = vadd.f32 %v1435_v4, %v1426_v0 }
 0x64c   :  { %1550 = vmatprep.mubr.f32.mxu0 %v1441_v5  ;;  %2768 = vmatpush3.bf16.msra.mxu1 %v2765_v2 }
 0x64d   :  { %1551 = vmatmul.mubr.f32.gmra.mrb[30].mxu0 %v1440_v8  ;;  %2770 = vmatprep.subr.bf16.mxu1 %v2769_v26 }
 0x64e   :  { %2570 = vmatprep.mubr.msk.f32.mxu0 %vm2858_vm5, %v2856_v62 }
 0x650   :  { %2772 = vmatpush3.bf16.msra.mxu1 %v2769_v26 }
 0x651   :  { %2774 = vmatprep.subr.bf16.mxu1 %v2773_v6 }
 0x654   :  { %2776 = vmatpush3.bf16.msra.mxu1 %v2773_v6 }
 0x655   :  { %2778 = vmatprep.subr.bf16.mxu1 %v2777_v25 }
 0x658   :  { %2780 = vmatpush3.bf16.msra.mxu1 %v2777_v25  ;;  %v1784_v25 = vld [vmem:[%s3965_s13 + $0x48] sm:$0xff] }
 0x659   :  { %2782 = vmatprep.subr.bf16.mxu1 %v2781_v23  ;;  %v2790_v16 = vpack.c.bf16 %v1784_v25, %v1783_v15  ;;  %v3877_v15 = vld [vmem:[%s3968_s22] ss:$0 sm:$0xff] }
 0x65b   :  { %2791 = vmatpush3.bf16.msra.mxu0 %v2790_v16 }
 0x65c   :  { %2784 = vmatpush3.bf16.msra.mxu1 %v2781_v23  ;;  %2792 = vmatprep.subr.bf16.mxu0 %v2857_v48  ;;  %v1786_v23 = vld [vmem:[%s3965_s13 + $0x58] sm:$0xff] }
 0x65d   :  { %2786 = vmatprep.subr.bf16.mxu1 %v2785_v1  ;;  %v2793_v24 = vpack.c.bf16 %v1786_v23, %v1785_v22  ;;  %v1777_v23 = vld [vmem:[%s3965_s13 + $0x10] sm:$0xff] }
 0x65f   :  { %2794 = vmatpush3.bf16.msra.mxu0 %v2793_v24  ;;  %v1778_v24 = vld [vmem:[%s3965_s13 + $0x18] sm:$0xff] }
 0x660   :  { %2788 = vmatpush3.bf16.msra.mxu1 %v2785_v1  ;;  %2795 = vmatprep.subr.bf16.mxu0 %v2857_v48  ;;  %v1787_v1 = vld [vmem:[%s3965_s13 + $0x60] sm:$0xff] }
 0x661   :  { %2813 = vmatprep.subr.bf16.mxu1 %v2857_v48 }
 0x71c   :  { %v2281_v44 = vpop.f32.mrb[28].mxu0 }
 0x71d   :  { %v2282_v61 = vpop.f32.mrb[29].mxu0 }
 0x71e   :  { %v2283_v28 = vadd.f32 %v2282_v61, %v2281_v44  ;;  %v1788_v44 = vld [vmem:[%s3965_s13 + $0x68] sm:$0xff]  ;;  %v1789_v61 = vld [vmem:[%s3965_s13 + $0x70] sm:$0xff] }
 0x720   :  { %v1548_v50 = vadd.f32 %v2283_v28, %v2130_v58  ;;  %v2284_v29 = vpop.f32.mrb[30].mxu0  ;;  %v1790_v28 = vld [vmem:[%s3965_s13 + $0x78] sm:$0xff] }
 0x721   :  { %v2285_v30 = vpop.f32.mrb[31].mxu0 }
 0x722   :  { %v1556_v21 = vmax.f32 %v1548_v50, 0.0  ;;  %v2286_v32 = vadd.f32 %v2285_v30, %v2284_v29  ;;  %v2799_v50 = vpack.c.bf16 %v1790_v28, %v1789_v61  ;;  %v2133_v29 = vld [vmem:[%s3966_s12] ss:$0 sm:$0xff] }
 0x724   :  { %v1560_v33 = vrot.slane %v1556_v21, 4  ;;  %v1553_v34 = vadd.f32 %v2286_v32, %v2130_v58  ;;  %v2796_v58 = vpack.c.bf16 %v1788_v44, %v1787_v1  ;;  %v2805_v1 = vpack.c.bf16 %v1778_v24, %v1777_v23  ;;  %v1779_v44 = vld [vmem:[%s3965_s13 + $0x20] sm:$0xff] }
 0x726   :  { %v1561_v35 = vadd.f32 %v1560_v33, %v1556_v21  ;;  %v1557_v36 = vmax.f32 %v1553_v34, 0.0  ;;  %2797 = vmatpush3.bf16.msra.mxu0 %v2796_v58  ;;  %v1780_v58 = vld [vmem:[%s3965_s13 + $0x28] sm:$0xff] }
 0x727   :  { %2798 = vmatprep.subr.bf16.mxu0 %v2857_v48  ;;  %v2808_v28 = vpack.c.bf16 %v1780_v58, %v1779_v44 }
 0x728   :  { %v1562_v39 = vrot.slane %v1561_v35, 2  ;;  %v1579_v20 = vrot.slane %v1557_v36, 4 }
 0x72a   :  { %v1563_v11 = vadd.f32 %v1562_v39, %v1561_v35  ;;  %v1580_v56 = vadd.f32 %v1579_v20, %v1557_v36  ;;  %2800 = vmatpush3.bf16.msra.mxu0 %v2799_v50 }
 0x72b   :  { %2801 = vmatprep.subr.bf16.mxu0 %v2857_v48 }
 0x72c   :  { %v1564_v12 = vrot.slane %v1563_v11, 1  ;;  %v1581_v13 = vrot.slane %v1580_v56, 2 }
 0x72e   :  { %v1565_v14 = vadd.f32 %v1564_v12, %v1563_v11  ;;  %v1582_v17 = vadd.f32 %v1581_v13, %v1580_v56 }
 0x730   :  { %v1566_v40 = vmul.f32 0.125, %v1565_v14  ;;  %v1583_v41 = vrot.slane %v1582_v17, 1 }
 0x732   :  { %v1567_v43 = vsub.f32 %v1556_v21, %v1566_v40  ;;  %v1584_v18 = vadd.f32 %v1583_v41, %v1582_v17 }
 0x734   :  { %v1568_v4 = vmul.f32 %v1567_v43, %v1567_v43  ;;  %v1585_v46 = vmul.f32 0.125, %v1584_v18 }
 0x736   :  { %v1569_v45 = vrot.slane %v1568_v4, 4  ;;  %v1586_v42 = vsub.f32 %v1557_v36, %v1585_v46 }
 0x738   :  { %v1570_v31 = vadd.f32 %v1569_v45, %v1568_v4  ;;  %v1587_v37 = vmul.f32 %v1586_v42, %v1586_v42 }
 0x73a   :  { %v1571_v38 = vrot.slane %v1570_v31, 2  ;;  %v1588_v47 = vrot.slane %v1587_v37, 4 }
 0x73c   :  { %v1572_v53 = vadd.f32 %v1571_v38, %v1570_v31  ;;  %v1589_v27 = vadd.f32 %v1588_v47, %v1587_v37 }
 0x73e   :  { %v1573_v63 = vrot.slane %v1572_v53, 1  ;;  %v1590_v0 = vrot.slane %v1589_v27, 2 }
 0x740   :  { %v1574_v5 = vadd.f32 %v1573_v63, %v1572_v53  ;;  %v1591_v8 = vadd.f32 %v1590_v0, %v1589_v27 }
 0x742   :  { %v1575_v60 = vmul.f32 0.125, %v1574_v5  ;;  %v1592_v9 = vrot.slane %v1591_v8, 1 }
 0x744   :  { %v1576_v52 = vadd.f32 1e-05, %v1575_v60  ;;  %v1593_v59 = vadd.f32 %v1592_v9, %v1591_v8 }
 0x746   :  { %2845 = vrsqrt.f32 %v1576_v52  ;;  %v1594_v10 = vmul.f32 0.125, %v1593_v59 }
 0x748   :  { %v1595_v3 = vadd.f32 1e-05, %v1594_v10 }
 0x74a   :  { %2847 = vrsqrt.f32 %v1595_v3 }
 0x750   :  { %v2846_v7 = vpop.eup %2845 }
 0x751   :  { %v1578_v2 = vmul.f32 %v2846_v7, %v1567_v43 }
 0x753   :  { %v1604_v19 = vmul.f32 %v2131_v54, %v1578_v2 }
 0x754   :  { %v2848_v26 = vpop.eup %2847 }
 0x755   :  { %v1597_v49 = vmul.f32 %v2848_v26, %v1586_v42  ;;  %v1612_v51 = vadd.f32 %v2132_v57, %v1604_v19 }
 0x757   :  { %v1605_v6 = vmul.f32 %v2131_v54, %v1597_v49  ;;  %2551 = vmatprep.mubr.f32.mxu1 %v1612_v51  ;;  %v3866_v49 = vld [vmem:[%s3967_s21] ss:$0 sm:$0xff] }
 0x759   :  { %v1613_v55 = vadd.f32 %v2132_v57, %v1605_v6  ;;  %v1775_v6 = vld [vmem:[%s3965_s13] sm:$0xff] }
 0x75b   :  { %2552 = vmatmul.mubr.f32.vlgmr.msra.gmra.mrb[34].mxu1 %v1613_v55  ;;  %v1776_v55 = vld [vmem:[%s3965_s13 + $0x8] sm:$0xff] }
 0x75c   :  { %2608 = vmatprep.mubr.msk.f32.mxu1 %vm2858_vm5, %v2856_v62  ;;  %v2802_v16 = vpack.c.bf16 %v1776_v55, %v1775_v6 }
 0x82e   :  { %v2553_v30 = vpop.f32.mrb[34].mxu1 }
 0x82f   :  { %v1709_v21 = vadd.f32 %v2553_v30, %v2133_v29  ;;  %v1703_v32 = vpop.f32.mrb[35].mxu1 }
 0x830   :  { %v1704_v33 = vadd.f32 %v2133_v29, %v1703_v32  ;;  %v1782_v29 = vld [vmem:[%s3965_s13 + $0x38] sm:$0xff] }
 0x831   :  { %v1713_v34 = vmax.f32 %v1709_v21, 0.0 }
 0x832   :  { %v1712_v35 = vmax.f32 %v1704_v33, 0.0  ;;  %v1969_v33 = vld [vmem:[%s3969_s15] sm:$0xff] }
 0x833   :  { %v1738_v36 = vsel %vm1716_vm6, %v1713_v34, 0.0 }
 0x834   :  { %v1739_v39 = vrot.slane %v1738_v36, 4  ;;  %v1717_v20 = vsel %vm1716_vm6, %v1712_v35, 0.0 }
 0x835   :  { %v1718_v11 = vrot.slane %v1717_v20, 4 }
 0x836   :  { %v1740_v56 = vadd.f32 %v1739_v39, %v1738_v36  ;;  %v1971_v36 = vld [vmem:[%s3969_s15 + $0x10] sm:$0xff]  ;;  %v1972_v39 = vld [vmem:[%s3969_s15 + $0x18] sm:$0xff] }
 0x837   :  { %v1719_v12 = vadd.f32 %v1718_v11, %v1717_v20  ;;  %v2817_v20 = vpack.c.bf16 %v1972_v39, %v1971_v36  ;;  %v1973_v11 = vld [vmem:[%s3969_s15 + $0x20] sm:$0xff] }
 0x838   :  { %v1741_v13 = vrot.slane %v1740_v56, 2 }
 0x839   :  { %v1720_v14 = vrot.slane %v1719_v12, 2 }
 0x83a   :  { %v1742_v17 = vadd.f32 %v1741_v13, %v1740_v56  ;;  %v1974_v56 = vld [vmem:[%s3969_s15 + $0x28] sm:$0xff]  ;;  %v1975_v13 = vld [vmem:[%s3969_s15 + $0x30] sm:$0xff] }
 0x83b   :  { %v1721_v40 = vadd.f32 %v1720_v14, %v1719_v12  ;;  %v2820_v12 = vpack.c.bf16 %v1974_v56, %v1973_v11  ;;  %v1976_v14 = vld [vmem:[%s3969_s15 + $0x38] sm:$0xff] }
 0x83c   :  { %v1743_v41 = vrot.slane %v1742_v17, 1 }
 0x83d   :  { %v1722_v43 = vrot.slane %v1721_v40, 1 }
 0x83e   :  { %v1744_v18 = vadd.f32 %v1743_v41, %v1742_v17  ;;  %v2823_v17 = vpack.c.bf16 %v1976_v14, %v1975_v13 }
 0x83f   :  { %v1723_v4 = vadd.f32 %v1722_v43, %v1721_v40 }
 0x840   :  { %v1745_v46 = vmul.f32 0.125, %v1744_v18  ;;  %v2138_v18 = vld [vmem:[%s3970_s14] ss:$0 sm:$0xff] }
 0x841   :  { %v1724_v45 = vmul.f32 0.125, %v1723_v4 }
 0x842   :  { %v1746_v42 = vsub.f32 %v1713_v34, %v1745_v46  ;;  %v1970_v34 = vld [vmem:[%s3969_s15 + $0x8] sm:$0xff] }
 0x843   :  { %v1725_v31 = vsub.f32 %v1712_v35, %v1724_v45  ;;  %v2814_v35 = vpack.c.bf16 %v1970_v34, %v1969_v33 }
 0x844   :  { %v1747_v37 = vmul.f32 %v1746_v42, %v1746_v42 }
 0x845   :  { %v1726_v38 = vmul.f32 %v1725_v31, %v1725_v31  ;;  %2815 = vmatpush3.bf16.msra.mxu1 %v2814_v35 }
 0x846   :  { %v1748_v47 = vsel %vm1716_vm6, %v1747_v37, 0.0  ;;  %2816 = vmatprep.subr.bf16.mxu1 %v2857_v48 }
 0x847   :  { %v1749_v53 = vrot.slane %v1748_v47, 4  ;;  %v1727_v27 = vsel %vm1716_vm6, %v1726_v38, 0.0 }
 0x848   :  { %v1728_v63 = vrot.slane %v1727_v27, 4 }
 0x849   :  { %v1750_v0 = vadd.f32 %v1749_v53, %v1748_v47  ;;  %2818 = vmatpush3.bf16.msra.mxu1 %v2817_v20 }
 0x84a   :  { %v1729_v5 = vadd.f32 %v1728_v63, %v1727_v27  ;;  %2819 = vmatprep.subr.bf16.mxu1 %v2857_v48 }
 0x84b   :  { %v1751_v8 = vrot.slane %v1750_v0, 2 }
 0x84c   :  { %v1730_v60 = vrot.slane %v1729_v5, 2 }
 0x84d   :  { %v1752_v9 = vadd.f32 %v1751_v8, %v1750_v0  ;;  %2821 = vmatpush3.bf16.msra.mxu1 %v2820_v12 }
 0x84e   :  { %v1731_v52 = vadd.f32 %v1730_v60, %v1729_v5  ;;  %2822 = vmatprep.subr.bf16.mxu1 %v2857_v48 }
 0x84f   :  { %v1753_v59 = vrot.slane %v1752_v9, 1 }
 0x850   :  { %v1732_v3 = vrot.slane %v1731_v52, 1 }
 0x851   :  { %v1754_v10 = vadd.f32 %v1753_v59, %v1752_v9  ;;  %2824 = vmatpush3.bf16.msra.mxu1 %v2823_v17 }
 0x852   :  { %v1733_v2 = vadd.f32 %v1732_v3, %v1731_v52 }
 0x853   :  { %v1755_v7 = vmul.f32 0.125, %v1754_v10 }
 0x854   :  { %v1734_v57 = vmul.f32 0.125, %v1733_v2 }
 0x855   :  { %v1756_v54 = vadd.f32 1e-05, %v1755_v7 }
 0x856   :  { %v1735_v19 = vadd.f32 1e-05, %v1734_v57 }
 0x857   :  { %2849 = vrsqrt.f32 %v1756_v54 }
 0x858   :  { %2851 = vrsqrt.f32 %v1735_v19 }
 0x861   :  { %v2850_v26 = vpop.eup %2849 }
 0x862   :  { %v1758_v51 = vmul.f32 %v2850_v26, %v1746_v42  ;;  %v2852_v61 = vpop.eup %2851 }
 0x863   :  { %v1737_v50 = vmul.f32 %v2852_v61, %v1725_v31 }
 0x864   :  { %v1766_v25 = vmul.f32 %v3866_v49, %v1758_v51  ;;  %v2139_v51 = vld [vmem:[%s3971_s16] ss:$0 sm:$0xff] }
 0x865   :  { %v1765_v21 = vmul.f32 %v3866_v49, %v1737_v50 }
 0x866   :  { %v1774_v22 = vadd.f32 %v3877_v15, %v1766_v25 }
 0x867   :  { %v1773_v32 = vadd.f32 %v3877_v15, %v1765_v21 }
 0x868   :  { %2571 = vmatmul.mubr.msk.f32.vlgmr.msra.gmra.mrb[32].mxu0 %vm1716_vm6, %v1774_v22 }
 0x869   :  { %2803 = vmatpush3.bf16.msra.mxu0 %v2802_v16  ;;  %2589 = vmatprep.mubr.msk.f32.mxu0 %vm2858_vm5, %v2856_v62  ;;  %v1781_v62 = vld [vmem:[%s3965_s13 + $0x30] sm:$0xff] }
 0x86a   :  { %2804 = vmatprep.subr.bf16.mxu0 %v2857_v48  ;;  %v2811_v30 = vpack.c.bf16 %v1782_v29, %v1781_v62 }
 0x86d   :  { %2806 = vmatpush3.bf16.msra.mxu0 %v2805_v1 }
 0x86e   :  { %2807 = vmatprep.subr.bf16.mxu0 %v2857_v48 }
 0x871   :  { %2809 = vmatpush3.bf16.msra.mxu0 %v2808_v28 }
 0x872   :  { %2810 = vmatprep.subr.bf16.mxu0 %v2857_v48 }
 0x875   :  { %2812 = vmatpush3.bf16.msra.mxu0 %v2811_v30 }
 0x878   :  { %2590 = vmatmul.mubr.msk.f32.vlgmr.msra.gmra.mrb[34].mxu0 %vm1716_vm6, %v1773_v32 }
 0x93b   :  { %v1860_v40 = vpop.f32.mrb[32].mxu0 }
 0x93c   :  { %v2572_v41 = vpop.f32.mrb[33].mxu0 }
 0x94b   :  { %v1933_v43 = vpop.f32.mrb[34].mxu0 }
 0x94c   :  { %v1934_v4 = vadd.f32 %v1933_v43, %v1860_v40  ;;  %v2591_v46 = vpop.f32.mrb[35].mxu0 }
 0x94e   :  { %v1944_v45 = vadd.f32 %v2138_v18, %v1934_v4 }
 0x950   :  { %v1945_v42 = vmax.f32 %v1944_v45, 0.0 }
 0x952   :  { %v1946_v31 = vsel %vm1716_vm6, %v1945_v42, 0.0 }
 0x953   :  { %v1947_v37 = vrot.slane %v1946_v31, 4 }
 0x955   :  { %v1948_v38 = vadd.f32 %v1947_v37, %v1946_v31 }
 0x957   :  { %v1949_v47 = vrot.slane %v1948_v38, 2 }
 0x959   :  { %v1950_v53 = vadd.f32 %v1949_v47, %v1948_v38 }
 0x95b   :  { %v1951_v27 = vrot.slane %v1950_v53, 1 }
 0x95d   :  { %v1952_v48 = vadd.f32 %v1951_v27, %v1950_v53 }
 0x95f   :  { %v1953_v63 = vmul.f32 0.125, %v1952_v48 }
 0x961   :  { %v1954_v0 = vsub.f32 %v1945_v42, %v1953_v63 }
 0x963   :  { %v1955_v5 = vmul.f32 %v1954_v0, %v1954_v0 }
 0x965   :  { %v1956_v8 = vsel %vm1716_vm6, %v1955_v5, 0.0 }
 0x966   :  { %v1957_v60 = vrot.slane %v1956_v8, 4 }
 0x968   :  { %v1958_v9 = vadd.f32 %v1957_v60, %v1956_v8 }
 0x96a   :  { %v1959_v52 = vrot.slane %v1958_v9, 2 }
 0x96c   :  { %v1960_v59 = vadd.f32 %v1959_v52, %v1958_v9 }
 0x96e   :  { %v1961_v10 = vrot.slane %v1960_v59, 1 }
 0x970   :  { %v1962_v3 = vadd.f32 %v1961_v10, %v1960_v59 }
 0x972   :  { %v1963_v7 = vmul.f32 0.125, %v1962_v3 }
 0x974   :  { %v1964_v54 = vadd.f32 1e-05, %v1963_v7 }
 0x976   :  { %2853 = vrsqrt.f32 %v1964_v54 }
 0x980   :  { %v2854_v2 = vpop.eup %2853 }
 0x981   :  { %v1966_v57 = vmul.f32 %v2854_v2, %v1954_v0 }
 0x983   :  { %v1967_v19 = vmul.f32 %v3866_v49, %v1966_v57 }
 0x985   :  { %v1968_v26 = vadd.f32 %v3877_v15, %v1967_v19 }
 0x987   :  { %2609 = vmatmul.mubr.msk.f32.vlgmr.msra.gmra.mrb[36].mxu1 %vm1716_vm6, %v1968_v26 }
 0xa5a   :  { %v2053_v6 = vpop.f32.mrb[36].mxu1 }
 0xa5b   :  { %v2054_v55 = vadd.f32 %v2139_v51, %v2053_v6  ;;  %v2610_v25 = vpop.f32.mrb[37].mxu1 }
 0xa5d   :  { %2058 = vst.msk [vmem:[%s3972_s23] sm:$0xff] %vm2057_vm7, %v2054_v55 }

</bundles_post_ra>
